<compile_context>
chip_gen: v6e
topology: v6e:2x2x1
jax: 0.10.0
libtpu: 0.0.40
codegen_flags: <defaults>
</compile_context>

<pallas_src>
import jax
import jax.numpy as jnp
from jax import lax
from jax.experimental import pallas as pl
from jax.experimental.pallas import tpu as pltpu

EPS = 1e-5


def _round_up(x, m):
    return (x + m - 1) // m * m


def _fused_kernel(s_ref, x111_ref, x105_ref, w_ref, g_ref, b_ref,
                  o_ref, z_ref):
    """Two-step fused kernel (grid=(2,), dimension_semantics=('arbitrary',)).

    step 0: x117 = s * x111 ; y1 = W1 @ x117 ; z = relu(x105 + BN1(y1)) -> z_ref
    step 1: y2 = W2 @ z     ; o = BN2(y2)                               -> o_ref

    s_ref   : (C, 1) or (C, P) f32   per-channel (optionally per-pixel) scale
    x111_ref: (C, P) f32
    x105_ref: (C, P) f32
    w_ref   : (1, C, C) bf16         stage conv weight, native (Cout, Cin)
    g_ref   : (1, C, 1) f32          stage BN gamma
    b_ref   : (1, C, 1) f32          stage BN beta
    o_ref   : (C, P) f32
    z_ref   : (C, P) bf16            VMEM scratch, persists across grid steps
    """
    step = pl.program_id(0)
    p = x111_ref.shape[1]
    inv_p = 1.0 / p
    # (Cout, Cin) @ (Cin, P) -> (Cout, P): contract LHS axis 1 with RHS axis 0.
    contract = (((1,), (0,)), ((), ()))

    def bn_affine(y):
        # Single-pass biased batch stats folded into per-channel y*a + c.
        m = jnp.sum(y, axis=1, keepdims=True) * inv_p
        e = jnp.sum(y * y, axis=1, keepdims=True) * inv_p
        v = jnp.maximum(e - m * m, 0.0)          # clamp f32 cancellation
        a = g_ref[0] * lax.rsqrt(v + EPS)
        c = b_ref[0] - m * a
        return y * a + c

    @pl.when(step == 0)
    def _stage1():
        x117 = (x111_ref[...] * s_ref[...]).astype(jnp.bfloat16)
        y1 = lax.dot_general(w_ref[0], x117, dimension_numbers=contract,
                             preferred_element_type=jnp.float32)
        z = jnp.maximum(x105_ref[...] + bn_affine(y1), 0.0)
        z_ref[...] = z.astype(jnp.bfloat16)

    @pl.when(step == 1)
    def _stage2():
        y2 = lax.dot_general(w_ref[0], z_ref[...], dimension_numbers=contract,
                             preferred_element_type=jnp.float32)
        o_ref[...] = bn_affine(y2)


def prepare_params(w1, w2, g1, b1, g2, b2):
    """One-time parameter preprocessing -- do NOT call per forward.

    Returns:
      w_stacked : (2, Cout, Cin) bf16   both 1x1-conv weights (no transpose
                                        needed for the channels-first kernel)
      gamma     : (2, C, 1) f32         BN weights, stage-indexed
      beta      : (2, C, 1) f32         BN biases, stage-indexed
    """
    C = g1.shape[0]
    w_stacked = jnp.stack([jnp.reshape(w1, (C, C)),
                           jnp.reshape(w2, (C, C))]).astype(jnp.bfloat16)
    gamma = jnp.stack([g1, g2]).reshape(2, C, 1).astype(jnp.float32)
    beta = jnp.stack([b1, b2]).reshape(2, C, 1).astype(jnp.float32)
    return w_stacked, gamma, beta


def fused_forward_nchw(x116, x111, x105, w_stacked, gamma, beta):
    """NCHW forward matching M.forward(x116, x111, x105).

    x116: (Ns, C, 1, 1) with Ns in {1, N}; x111 / x105: (N, C, H, W);
    (w_stacked, gamma, beta) come from prepare_params().  Returns (N,C,H,W) f32.
    For N == 1 (the module's shape) there are zero layout passes around the
    kernel: NCHW -> (C, P) is a free reshape.
    """
    N, C, H, W = x111.shape
    P = N * H * W

    if N == 1:
        x111_cp = x111.reshape(C, P).astype(jnp.float32)
        x105_cp = x105.reshape(C, P).astype(jnp.float32)
    else:
        # TODO(synk): N>1 NCHW needs one permute pass per activation here; keep
        # the surrounding graph N=1 / channels-first to avoid it.
        x111_cp = jnp.transpose(x111, (1, 0, 2, 3)).reshape(C, P).astype(jnp.float32)
        x105_cp = jnp.transpose(x105, (1, 0, 2, 3)).reshape(C, P).astype(jnp.float32)

    if x116.shape[0] == 1:
        s_cp = x116.reshape(C, 1).astype(jnp.float32)   # shared per-channel scale
    else:
        # Per-sample scale (not the module's case).
        # TODO(synk): broadcast per-sample scale in-kernel instead of in HBM.
        s_cp = jnp.broadcast_to(
            jnp.transpose(x116.reshape(N, C)).reshape(C, N, 1).astype(jnp.float32),
            (C, N, H * W)).reshape(C, P)

    # VMEM budget: double-buffered inputs + f32 intermediates; clamp well under
    # v7x's 64 MiB physical VMEM (v5e/v6e have 128 MiB physical).
    Pp = _round_up(P, 128)
    Cp = _round_up(C, 8)
    act = Cp * Pp * 4
    est = (2 * 2 * act                                     # x111, x105 (2 bufs each)
           + 2 * act                                       # output (2 bufs)
           + 2 * Cp * _round_up(C, 128) * 2                # stage weight bf16 (2 bufs)
           + 2 * Cp * _round_up(s_cp.shape[1], 128) * 4    # scale
           + 4 * Cp * 128 * 4                              # gamma / beta
           + Cp * Pp * 2                                   # z scratch bf16
           + (2 << 20))                                    # slack
    vmem_limit = int(min(max(est, 16 * 1024 * 1024), 40 * 1024 * 1024))

    io_bytes = ((x111_cp.size + x105_cp.size + s_cp.size + P * C) * 4
                + w_stacked.size * 2 + (gamma.size + beta.size) * 4)
    cost = pl.CostEstimate(flops=4 * P * C * C + 14 * P * C,
                           transcendentals=2 * C,
                           bytes_accessed=int(io_bytes))

    grid_spec = pltpu.PrefetchScalarGridSpec(
        num_scalar_prefetch=0,
        grid=(2,),                       # one step per conv+BN stage
        in_specs=[
            pl.BlockSpec(s_cp.shape, lambda i: (0, 0)),
            pl.BlockSpec((C, P), lambda i: (0, 0)),
            pl.BlockSpec((C, P), lambda i: (0, 0)),
            pl.BlockSpec((1, C, C), lambda i: (i, 0, 0)),   # stage weight: prefetched
            pl.BlockSpec((1, C, 1), lambda i: (i, 0, 0)),   # stage gamma
            pl.BlockSpec((1, C, 1), lambda i: (i, 0, 0)),   # stage beta
        ],
        out_specs=pl.BlockSpec((C, P), lambda i: (0, 0)),
        scratch_shapes=[pltpu.VMEM((C, P), jnp.bfloat16)],
    )

    out_cp = pl.pallas_call(
        _fused_kernel,
        out_shape=jax.ShapeDtypeStruct((C, P), jnp.float32),
        grid_spec=grid_spec,
        compiler_params=pltpu.CompilerParams(
            dimension_semantics=("arbitrary",),   # stage 2 depends on stage 1
            vmem_limit_bytes=vmem_limit),
        cost_estimate=cost,
    )(s_cp, x111_cp, x105_cp, w_stacked, gamma, beta)

    if N == 1:
        return out_cp.reshape(N, C, H, W)
    return jnp.transpose(out_cp.reshape(C, N, H, W), (1, 0, 2, 3))


def reference_nchw(x116, x111, x105, w1, g1, b1, w2, g2, b2):
    """Pure-JAX f32 reference mirroring the PyTorch training-mode forward."""
    C = x111.shape[1]
    w1m = jnp.reshape(w1, (C, C))
    w2m = jnp.reshape(w2, (C, C))
    x117 = x116 * x111
    y1 = jnp.einsum('nihw,oi->nohw', x117, w1m)
    m1 = jnp.mean(y1, axis=(0, 2, 3), keepdims=True)
    v1 = jnp.mean((y1 - m1) ** 2, axis=(0, 2, 3), keepdims=True)
    bn1 = ((y1 - m1) * lax.rsqrt(v1 + EPS) * g1.reshape(1, C, 1, 1)
           + b1.reshape(1, C, 1, 1))
    z = jnp.maximum(x105 + bn1, 0.0)
    y2 = jnp.einsum('nihw,oi->nohw', z, w2m)
    m2 = jnp.mean(y2, axis=(0, 2, 3), keepdims=True)
    v2 = jnp.mean((y2 - m2) ** 2, axis=(0, 2, 3), keepdims=True)
    return ((y2 - m2) * lax.rsqrt(v2 + EPS) * g2.reshape(1, C, 1, 1)
            + b2.reshape(1, C, 1, 1))


if __name__ == "__main__":
    key = jax.random.PRNGKey(0)
    ks = jax.random.split(key, 9)

    # Small shapes consistent with the module (original: N=1, C=896, H=W=14).
    N, C, H, W = 1, 128, 8, 8

    x116 = jax.random.normal(ks[0], (1, C, 1, 1), dtype=jnp.float32)
    x111 = jax.random.normal(ks[1], (N, C, H, W), dtype=jnp.float32)
    x105 = jax.random.normal(ks[2], (N, C, H, W), dtype=jnp.float32)

    # Parameters (shapes from the module __init__).
    w1 = jax.random.normal(ks[3], (C, C, 1, 1), dtype=jnp.float32) * 0.05  # conv2d38
    w2 = jax.random.normal(ks[4], (C, C, 1, 1), dtype=jnp.float32) * 0.05  # conv2d39
    g1 = 1.0 + 0.1 * jax.random.normal(ks[5], (C,), dtype=jnp.float32)     # bn24 weight
    b1 = 0.1 * jax.random.normal(ks[6], (C,), dtype=jnp.float32)           # bn24 bias
    g2 = 1.0 + 0.1 * jax.random.normal(ks[7], (C,), dtype=jnp.float32)     # bn25 weight
    b2 = 0.1 * jax.random.normal(ks[8], (C,), dtype=jnp.float32)           # bn25 bias

    # One-time parameter preprocessing (bf16 weight stack) -- hoisted out of the
    # per-call forward as required by the perf review.
    params = prepare_params(w1, w2, g1, b1, g2, b2)
    fwd = jax.jit(fused_forward_nchw)

    # --- N=1 (the module's shape family): transpose-free channels-first path ---
    out = jax.block_until_ready(fwd(x116, x111, x105, *params))
    ref = jax.block_until_ready(reference_nchw(x116, x111, x105, w1, g1, b1, w2, g2, b2))
    assert out.shape == (N, C, H, W)
    err = float(jnp.max(jnp.abs(out - ref)))
    # Tolerance accounts for bf16 matmul operands (stats/accumulation are f32).
    assert jnp.allclose(out, ref, atol=5e-2, rtol=5e-2), err

    # --- N=2 with per-sample scale: exercises the batched + per-sample paths ---
    N2 = 2
    x116b = jax.random.normal(ks[0], (N2, C, 1, 1), dtype=jnp.float32)
    x111b = jax.random.normal(ks[1], (N2, C, H, W), dtype=jnp.float32)
    x105b = jax.random.normal(ks[2], (N2, C, H, W), dtype=jnp.float32)
    outb = jax.block_until_ready(fwd(x116b, x111b, x105b, *params))
    refb = jax.block_until_ready(reference_nchw(x116b, x111b, x105b, w1, g1, b1, w2, g2, b2))
    assert outb.shape == (N2, C, H, W)
    errb = float(jnp.max(jnp.abs(outb - refb)))
    assert jnp.allclose(outb, refb, atol=5e-2, rtol=5e-2), errb

    print("KERNEL_OK")
</pallas_src>

<mosaic_0001>
module attributes {stable_mosaic.version = 11 : i64} {
  func.func @_fused_kernel(%arg0: i32, %arg1: memref<128x1xf32, #tpu.memory_space<vmem>>, %arg2: memref<128x64xf32, #tpu.memory_space<vmem>>, %arg3: memref<128x64xf32, #tpu.memory_space<vmem>>, %arg4: memref<1x128x128xbf16, #tpu.memory_space<vmem>>, %arg5: memref<1x128x1xf32, #tpu.memory_space<vmem>>, %arg6: memref<1x128x1xf32, #tpu.memory_space<vmem>>, %arg7: memref<128x64xf32, #tpu.memory_space<vmem>>, %arg8: memref<128x64xbf16, #tpu.memory_space<vmem>>) attributes {dimension_semantics = [#tpu.dimension_semantics<arbitrary>], iteration_bounds = array<i64: 2>, scalar_prefetch = 0 : i64, scratch_operands = 1 : i64, tpu.core_type = #tpu.core_type<tc>, window_params = [{pipeline_mode = #tpu.pipeline_mode<synchronous>, transform_indices = @transform_0, window_bounds = array<i64: 128, 1>}, {pipeline_mode = #tpu.pipeline_mode<synchronous>, transform_indices = @transform_1, window_bounds = array<i64: 128, 64>}, {pipeline_mode = #tpu.pipeline_mode<synchronous>, transform_indices = @transform_2, window_bounds = array<i64: 128, 64>}, {transform_indices = @transform_3, window_bounds = array<i64: 1, 128, 128>}, {transform_indices = @transform_4, window_bounds = array<i64: 1, 128, 1>}, {transform_indices = @transform_5, window_bounds = array<i64: 1, 128, 1>}, {pipeline_mode = #tpu.pipeline_mode<synchronous>, transform_indices = @transform_6, window_bounds = array<i64: 128, 64>}]} {
    %c0_i32 = arith.constant 0 : i32
    %0 = arith.cmpi eq, %arg0, %c0_i32 : i32
    %1 = arith.extui %0 : i1 to i32
    %c0_i32_0 = arith.constant 0 : i32
    %2 = arith.cmpi ne, %1, %c0_i32_0 : i32
    scf.if %2 {
      %c0 = arith.constant 0 : index
      %c0_2 = arith.constant 0 : index
      %6 = vector.load %arg2[%c0, %c0_2] : memref<128x64xf32, #tpu.memory_space<vmem>>, vector<128x64xf32>
      %c0_3 = arith.constant 0 : index
      %c0_4 = arith.constant 0 : index
      %7 = vector.load %arg1[%c0_3, %c0_4] : memref<128x1xf32, #tpu.memory_space<vmem>>, vector<128x1xf32>
      %8 = vector.broadcast %7 : vector<128x1xf32> to vector<128x64xf32>
      %9 = arith.mulf %6, %8 : vector<128x64xf32>
      %10 = arith.truncf %9 : vector<128x64xf32> to vector<128x64xbf16>
      %c0_5 = arith.constant 0 : index
      %c0_6 = arith.constant 0 : index
      %c0_7 = arith.constant 0 : index
      %11 = vector.load %arg4[%c0_5, %c0_6, %c0_7] : memref<1x128x128xbf16, #tpu.memory_space<vmem>>, vector<1x128x128xbf16>
      %12 = vector.shape_cast %11 : vector<1x128x128xbf16> to vector<128x128xbf16>
      %cst = arith.constant dense<0.000000e+00> : vector<128x64xf32>
      %13 = tpu.matmul %12, %10, %cst {dimension_numbers = #tpu.dot_dimension_numbers<[1], [0], [0], [1], [0, 0, 1, 1], [], []>} : vector<128x128xbf16>, vector<128x64xbf16>, vector<128x64xf32> -> vector<128x64xf32>
      %c0_8 = arith.constant 0 : index
      %c0_9 = arith.constant 0 : index
      %14 = vector.load %arg3[%c0_8, %c0_9] : memref<128x64xf32, #tpu.memory_space<vmem>>, vector<128x64xf32>
      %cst_10 = arith.constant dense<0.000000e+00> : vector<128xf32>
      %15 = vector.multi_reduction <add>, %13, %cst_10 [1] : vector<128x64xf32> to vector<128xf32>
      %16 = vector.shape_cast %15 : vector<128xf32> to vector<128x1xf32>
      %cst_11 = arith.constant 1.562500e-02 : f32
      %17 = vector.broadcast %cst_11 : f32 to vector<128x1xf32>
      %18 = arith.mulf %16, %17 : vector<128x1xf32>
      %19 = arith.mulf %13, %13 : vector<128x64xf32>
      %cst_12 = arith.constant dense<0.000000e+00> : vector<128xf32>
      %20 = vector.multi_reduction <add>, %19, %cst_12 [1] : vector<128x64xf32> to vector<128xf32>
      %21 = vector.shape_cast %20 : vector<128xf32> to vector<128x1xf32>
      %cst_13 = arith.constant 1.562500e-02 : f32
      %22 = vector.broadcast %cst_13 : f32 to vector<128x1xf32>
      %23 = arith.mulf %21, %22 : vector<128x1xf32>
      %24 = arith.mulf %18, %18 : vector<128x1xf32>
      %25 = arith.subf %23, %24 : vector<128x1xf32>
      %cst_14 = arith.constant 0.000000e+00 : f32
      %26 = vector.broadcast %cst_14 : f32 to vector<128x1xf32>
      %27 = arith.maximumf %25, %26 : vector<128x1xf32>
      %c0_15 = arith.constant 0 : index
      %c0_16 = arith.constant 0 : index
      %c0_17 = arith.constant 0 : index
      %28 = vector.load %arg5[%c0_15, %c0_16, %c0_17] : memref<1x128x1xf32, #tpu.memory_space<vmem>>, vector<1x128x1xf32>
      %29 = vector.shape_cast %28 : vector<1x128x1xf32> to vector<128x1xf32>
      %cst_18 = arith.constant 9.99999974E-6 : f32
      %30 = vector.broadcast %cst_18 : f32 to vector<128x1xf32>
      %31 = arith.addf %27, %30 : vector<128x1xf32>
      %32 = math.rsqrt %31 : vector<128x1xf32>
      %33 = arith.mulf %29, %32 : vector<128x1xf32>
      %c0_19 = arith.constant 0 : index
      %c0_20 = arith.constant 0 : index
      %c0_21 = arith.constant 0 : index
      %34 = vector.load %arg6[%c0_19, %c0_20, %c0_21] : memref<1x128x1xf32, #tpu.memory_space<vmem>>, vector<1x128x1xf32>
      %35 = vector.shape_cast %34 : vector<1x128x1xf32> to vector<128x1xf32>
      %36 = arith.mulf %18, %33 : vector<128x1xf32>
      %37 = arith.subf %35, %36 : vector<128x1xf32>
      %38 = vector.broadcast %33 : vector<128x1xf32> to vector<128x64xf32>
      %39 = arith.mulf %13, %38 : vector<128x64xf32>
      %40 = vector.broadcast %37 : vector<128x1xf32> to vector<128x64xf32>
      %41 = arith.addf %39, %40 : vector<128x64xf32>
      %42 = arith.addf %14, %41 : vector<128x64xf32>
      %cst_22 = arith.constant 0.000000e+00 : f32
      %43 = vector.broadcast %cst_22 : f32 to vector<128x64xf32>
      %44 = arith.maximumf %42, %43 : vector<128x64xf32>
      %45 = arith.truncf %44 : vector<128x64xf32> to vector<128x64xbf16>
      %c0_23 = arith.constant 0 : index
      %c0_24 = arith.constant 0 : index
      %46 = vector.load %arg8[%c0_23, %c0_24] : memref<128x64xbf16, #tpu.memory_space<vmem>>, vector<128x64xbf16>
      tpu.vector_store %arg8[%c0_23, %c0_24], %45 {strides = array<i32>} : memref<128x64xbf16, #tpu.memory_space<vmem>>, vector<128x64xbf16>,
    } else {
    }
    %c1_i32 = arith.constant 1 : i32
    %3 = arith.cmpi eq, %arg0, %c1_i32 : i32
    %4 = arith.extui %3 : i1 to i32
    %c0_i32_1 = arith.constant 0 : i32
    %5 = arith.cmpi ne, %4, %c0_i32_1 : i32
    scf.if %5 {
      %c0 = arith.constant 0 : index
      %c0_2 = arith.constant 0 : index
      %c0_3 = arith.constant 0 : index
      %6 = vector.load %arg4[%c0, %c0_2, %c0_3] : memref<1x128x128xbf16, #tpu.memory_space<vmem>>, vector<1x128x128xbf16>
      %7 = vector.shape_cast %6 : vector<1x128x128xbf16> to vector<128x128xbf16>
      %c0_4 = arith.constant 0 : index
      %c0_5 = arith.constant 0 : index
      %8 = vector.load %arg8[%c0_4, %c0_5] : memref<128x64xbf16, #tpu.memory_space<vmem>>, vector<128x64xbf16>
      %cst = arith.constant dense<0.000000e+00> : vector<128x64xf32>
      %9 = tpu.matmul %7, %8, %cst {dimension_numbers = #tpu.dot_dimension_numbers<[1], [0], [0], [1], [0, 0, 1, 1], [], []>} : vector<128x128xbf16>, vector<128x64xbf16>, vector<128x64xf32> -> vector<128x64xf32>
      %cst_6 = arith.constant dense<0.000000e+00> : vector<128xf32>
      %10 = vector.multi_reduction <add>, %9, %cst_6 [1] : vector<128x64xf32> to vector<128xf32>
      %11 = vector.shape_cast %10 : vector<128xf32> to vector<128x1xf32>
      %cst_7 = arith.constant 1.562500e-02 : f32
      %12 = vector.broadcast %cst_7 : f32 to vector<128x1xf32>
      %13 = arith.mulf %11, %12 : vector<128x1xf32>
      %14 = arith.mulf %9, %9 : vector<128x64xf32>
      %cst_8 = arith.constant dense<0.000000e+00> : vector<128xf32>
      %15 = vector.multi_reduction <add>, %14, %cst_8 [1] : vector<128x64xf32> to vector<128xf32>
      %16 = vector.shape_cast %15 : vector<128xf32> to vector<128x1xf32>
      %cst_9 = arith.constant 1.562500e-02 : f32
      %17 = vector.broadcast %cst_9 : f32 to vector<128x1xf32>
      %18 = arith.mulf %16, %17 : vector<128x1xf32>
      %19 = arith.mulf %13, %13 : vector<128x1xf32>
      %20 = arith.subf %18, %19 : vector<128x1xf32>
      %cst_10 = arith.constant 0.000000e+00 : f32
      %21 = vector.broadcast %cst_10 : f32 to vector<128x1xf32>
      %22 = arith.maximumf %20, %21 : vector<128x1xf32>
      %c0_11 = arith.constant 0 : index
      %c0_12 = arith.constant 0 : index
      %c0_13 = arith.constant 0 : index
      %23 = vector.load %arg5[%c0_11, %c0_12, %c0_13] : memref<1x128x1xf32, #tpu.memory_space<vmem>>, vector<1x128x1xf32>
      %24 = vector.shape_cast %23 : vector<1x128x1xf32> to vector<128x1xf32>
      %cst_14 = arith.constant 9.99999974E-6 : f32
      %25 = vector.broadcast %cst_14 : f32 to vector<128x1xf32>
      %26 = arith.addf %22, %25 : vector<128x1xf32>
      %27 = math.rsqrt %26 : vector<128x1xf32>
      %28 = arith.mulf %24, %27 : vector<128x1xf32>
      %c0_15 = arith.constant 0 : index
      %c0_16 = arith.constant 0 : index
      %c0_17 = arith.constant 0 : index
      %29 = vector.load %arg6[%c0_15, %c0_16, %c0_17] : memref<1x128x1xf32, #tpu.memory_space<vmem>>, vector<1x128x1xf32>
      %30 = vector.shape_cast %29 : vector<1x128x1xf32> to vector<128x1xf32>
      %31 = arith.mulf %13, %28 : vector<128x1xf32>
      %32 = arith.subf %30, %31 : vector<128x1xf32>
      %33 = vector.broadcast %28 : vector<128x1xf32> to vector<128x64xf32>
      %34 = arith.mulf %9, %33 : vector<128x64xf32>
      %35 = vector.broadcast %32 : vector<128x1xf32> to vector<128x64xf32>
      %36 = arith.addf %34, %35 : vector<128x64xf32>
      %c0_18 = arith.constant 0 : index
      %c0_19 = arith.constant 0 : index
      %37 = vector.load %arg7[%c0_18, %c0_19] : memref<128x64xf32, #tpu.memory_space<vmem>>, vector<128x64xf32>
      tpu.vector_store %arg7[%c0_18, %c0_19], %36 {strides = array<i32>} : memref<128x64xf32, #tpu.memory_space<vmem>>, vector<128x64xf32>,
    } else {
    }
    return
  }
  func.func @transform_0(%arg0: i32) -> (i32, i32) {
    %c0_i32 = arith.constant 0 : i32
    %c0_i32_0 = arith.constant 0 : i32
    %c0_i32_1 = arith.constant 0 : i32
    return %c0_i32, %c0_i32_0 : i32, i32
  }
  func.func @transform_1(%arg0: i32) -> (i32, i32) {
    %c0_i32 = arith.constant 0 : i32
    %c0_i32_0 = arith.constant 0 : i32
    %c0_i32_1 = arith.constant 0 : i32
    return %c0_i32, %c0_i32_0 : i32, i32
  }
  func.func @transform_2(%arg0: i32) -> (i32, i32) {
    %c0_i32 = arith.constant 0 : i32
    %c0_i32_0 = arith.constant 0 : i32
    %c0_i32_1 = arith.constant 0 : i32
    return %c0_i32, %c0_i32_0 : i32, i32
  }
  func.func @transform_3(%arg0: i32) -> (i32, i32, i32) {
    %c0_i32 = arith.constant 0 : i32
    %c0_i32_0 = arith.constant 0 : i32
    %c0_i32_1 = arith.constant 0 : i32
    return %arg0, %c0_i32, %c0_i32_0 : i32, i32, i32
  }
  func.func @transform_4(%arg0: i32) -> (i32, i32, i32) {
    %c0_i32 = arith.constant 0 : i32
    %c0_i32_0 = arith.constant 0 : i32
    %c0_i32_1 = arith.constant 0 : i32
    return %arg0, %c0_i32, %c0_i32_0 : i32, i32, i32
  }
  func.func @transform_5(%arg0: i32) -> (i32, i32, i32) {
    %c0_i32 = arith.constant 0 : i32
    %c0_i32_0 = arith.constant 0 : i32
    %c0_i32_1 = arith.constant 0 : i32
    return %arg0, %c0_i32, %c0_i32_0 : i32, i32, i32
  }
  func.func @transform_6(%arg0: i32) -> (i32, i32) {
    %c0_i32 = arith.constant 0 : i32
    %c0_i32_0 = arith.constant 0 : i32
    %c0_i32_1 = arith.constant 0 : i32
    return %c0_i32, %c0_i32_0 : i32, i32
  }
}

</mosaic_0001>

<bundles_post_ra>
// kernel: fused_forward_nchw.1
= control target key start
LH: loop header
LB: loop body
LE: loop exit
PB: predicated region body
PF: predicated region fallthrough
CT: control target
= control target key end

     0   :  { %s2347_s21 = smov 0   ;;  %s3117_s0 = inlined_call_operand.vmem [shape: f32[128,1], index: 0, kind: input, shape index: {}]   ;;  %s3118_s1 = inlined_call_operand.vmem [shape: f32[128,64], index: 1, kind: input, shape index: {}]   ;;  %s3119_s2 = inlined_call_operand.vmem [shape: f32[128,64], index: 2, kind: input, shape index: {}]   ;;  %s3120_s3 = inlined_call_operand.vmem [shape: bf16[2,128,128], index: 3, kind: input, shape index: {}]   ;;  %s3121_s4 = inlined_call_operand.vmem [shape: f32[2,128,1], index: 4, kind: input, shape index: {}]   ;;  %s3122_s5 = inlined_call_operand.vmem [shape: f32[2,128,1], index: 5, kind: input, shape index: {}]   ;;  %s3123_s6 = inlined_call_operand.vmem [shape: f32[128,64], index: 6, kind: output, shape index: {}]  }
   0x1 LB: > { %s2353_s22 = sadd.s32 4294967295, %s2308_s21   ;;  %p2002_p0 = scmp.ge.s32.totalorder %s2308_s21, 1  ;;  %s2308_s21 = sphi %s2347_s21, %s16_s21  }
   0x2   : > { %p227_p1 = scmp.lt.s32.totalorder %s2308_s21, 3 }
   0x4   : > { %p228_p2 = pnand %p2002_p0, %p227_p1 }
   0x5   : > { %p262_p3 = scmp.lt.s32.totalorder (!%p228_p2), %s2353_s22, 1  ;;  %p2009_p4 = scmp.ne.s32.totalorder (!%p228_p2), %s2353_s22, 0 }
   0x6   : > { %231 = sbr.rel (%p228_p2) target bundleno = 1375 (0x55f), region = 44 }
   0xb   : > { %s263_s23 = scalar_select %p262_p3, %s2353_s22, 1 }
   0xc   : > { %281 = sbr.rel (%p2009_p4) target bundleno = 760 (0x2f8), region = 48 }
   0xd   : > { %s2053_s24 = sshll.u32 %s263_s23, 6  ;;  %s2054_s25 = sshll.u32 %s263_s23, 7 }
   0xe   : > { %s2362_s28 = scalar_lea.vmem %s3120_s3, %s2053_s24  ;;  %s2367_s7 = scalar_lea.vmem %s3121_s4, %s2054_s25 }
   0xf   : > { %s2372_s10 = scalar_lea.vmem %s3122_s5, %s2054_s25 }
  0x11   : > { %v312_v0 = vld [vmem:[%s3117_s0 + $0x70] sm:$0xff]  ;;  %v310_v1 = vld [vmem:[%s3117_s0 + $0x60] sm:$0xff]  ;;  %v2310_v2 = vmov 0   ;;  %v313_v3 = vld [vmem:[%s3117_s0 + $0x78] sm:$0xff]  ;;  %vm595_vm0 = vcmask 523264   ;;  %vm1188_vm1 = vcmask 519168  }
  0x12   : > { %2211 = vset.pattern.permute.xlu1 %v2310_v2  ;;  %2210 = vset.pattern.permute.xlu0 %v2310_v2  ;;  %v311_v4 = vld [vmem:[%s3117_s0 + $0x68] sm:$0xff]  ;;  %v309_v5 = vld [vmem:[%s3117_s0 + $0x58] sm:$0xff]  ;;  %v308_v6 = vld [vmem:[%s3117_s0 + $0x50] sm:$0xff] }
  0x13   : > { %386 = vperm.xlu0 %2210, %v312_v0   ;;  %376 = vperm.xlu1 %2211, %v310_v1   ;;  %v307_v7 = vld [vmem:[%s3117_s0 + $0x48] sm:$0xff]  ;;  %v306_v8 = vld [vmem:[%s3117_s0 + $0x40] sm:$0xff]  ;;  %v305_v9 = vld [vmem:[%s3117_s0 + $0x38] sm:$0xff] }
  0x14   : > { %v304_v10 = vld [vmem:[%s3117_s0 + $0x30] sm:$0xff]  ;;  %v303_v11 = vld [vmem:[%s3117_s0 + $0x28] sm:$0xff]  ;;  %v302_v12 = vld [vmem:[%s3117_s0 + $0x20] sm:$0xff] }
  0x15   : > { %v301_v13 = vld [vmem:[%s3117_s0 + $0x18] sm:$0xff]  ;;  %v300_v14 = vld [vmem:[%s3117_s0 + $0x10] sm:$0xff]  ;;  %v299_v15 = vld [vmem:[%s3117_s0 + $0x8] sm:$0xff] }
  0x16   : > { %v298_v16 = vld [vmem:[%s3117_s0] sm:$0xff]  ;;  %v296_v21 = vld [vmem:[%s3118_s1 + $0x70] sm:$0xff]  ;;  %v297_v23 = vld [vmem:[%s3118_s1 + $0x78] sm:$0xff] }
  0x17   : > { %391 = vperm.xlu0 %2210, %v313_v3   ;;  %381 = vperm.xlu1 %2211, %v311_v4   ;;  %v2212_v17 = vld [vmem:[%s2362_s28] sm:$0xff]   ;;  %v295_v24 = vld [vmem:[%s3118_s1 + $0x68] sm:$0xff]  ;;  %v293_v31 = vld [vmem:[%s3118_s1 + $0x58] sm:$0xff] }
  0x18   : > { %v2213_v18 = vld [vmem:[%s2362_s28 + $0x20] sm:$0xff]   ;;  %2120 = vmatprep.mubr.bf16.mxu0 %v2212_v17  ;;  %v292_v32 = vld [vmem:[%s3118_s1 + $0x50] sm:$0xff]  ;;  %v291_v39 = vld [vmem:[%s3118_s1 + $0x48] sm:$0xff] }
  0x19   : > { %2128 = vmatprep.mubr.bf16.mxu1 %v2213_v18  ;;  %v294_v22 = vld [vmem:[%s3118_s1 + $0x60] sm:$0xff]  ;;  %v289_v46 = vld [vmem:[%s3118_s1 + $0x38] sm:$0xff]  ;;  %v288_v47 = vld [vmem:[%s3118_s1 + $0x30] sm:$0xff] }
  0x1a   : > { %v290_v40 = vld [vmem:[%s3118_s1 + $0x40] sm:$0xff]  ;;  %v287_v53 = vld [vmem:[%s3118_s1 + $0x28] sm:$0xff]  ;;  %v285_v60 = vld [vmem:[%s3118_s1 + $0x18] sm:$0xff] }
  0x1b   : > { %371 = vperm.xlu1 %2211, %v309_v5   ;;  %366 = vperm.xlu0 %2210, %v308_v6   ;;  %v286_v54 = vld [vmem:[%s3118_s1 + $0x20] sm:$0xff]  ;;  %v284_v61 = vld [vmem:[%s3118_s1 + $0x10] sm:$0xff]  ;;  %v283_v3 = vld [vmem:[%s3118_s1 + $0x8] sm:$0xff] }
  0x1c   : > { %v282_v4 = vld [vmem:[%s3118_s1] sm:$0xff] }
  0x1f   : > { %361 = vperm.xlu1 %2211, %v307_v7   ;;  %356 = vperm.xlu0 %2210, %v306_v8  }
  0x23   : > { %351 = vperm.xlu1 %2211, %v305_v9   ;;  %346 = vperm.xlu0 %2210, %v304_v10  }
  0x27   : > { %341 = vperm.xlu1 %2211, %v303_v11   ;;  %336 = vperm.xlu0 %2210, %v302_v12   ;;  %v2214_v11 = vld [vmem:[%s2362_s28 + $0x8] sm:$0xff]  }
  0x28   : > { %v2215_v12 = vld [vmem:[%s2362_s28 + $0x28] sm:$0xff]  }
  0x2b   : > { %331 = vperm.xlu1 %2211, %v301_v13   ;;  %326 = vperm.xlu0 %2210, %v300_v14   ;;  %v2216_v13 = vld [vmem:[%s2362_s28 + $0x10] sm:$0xff]  }
  0x2c   : > { %v2218_v14 = vld [vmem:[%s2362_s28 + $0x30] sm:$0xff]  }
  0x2f   : > { %321 = vperm.xlu1 %2211, %v299_v15   ;;  %316 = vperm.xlu0 %2210, %v298_v16   ;;  %v2217_v15 = vld [vmem:[%s2362_s28 + $0x18] sm:$0xff]  }
  0x30   : > { %v2219_v16 = vld [vmem:[%s2362_s28 + $0x38] sm:$0xff]  }
  0x8e   : > { %v387_v19 = vpop.permute.xlu0 %386  ;;  %v377_v20 = vpop.permute.xlu1 %376 }
  0x8f   : > { %v408_v27 = vmul.f32 %v387_v19, %v296_v21  ;;  %v406_v28 = vmul.f32 %v377_v20, %v294_v22 }
  0x92   : > { %v392_v25 = vpop.permute.xlu0 %391  ;;  %v382_v26 = vpop.permute.xlu1 %381 }
  0x93   : > { %v409_v29 = vmul.f32 %v392_v25, %v297_v23  ;;  %v407_v30 = vmul.f32 %v382_v26, %v295_v24 }
  0x95   : > { %v417_v33 = vpack.c.bf16 %v409_v29, %v408_v27  ;;  %v416_v36 = vpack.c.bf16 %v407_v30, %v406_v28 }
  0x96   : > { %v372_v34 = vpop.permute.xlu1 %371  ;;  %v367_v35 = vpop.permute.xlu0 %366 }
  0x97   : > { %v405_v37 = vmul.f32 %v372_v34, %v293_v31  ;;  %v404_v38 = vmul.f32 %v367_v35, %v292_v32  ;;  %2104 = vmatprep.subr.bf16.mxu0 %v417_v33  ;;  %2168 = vmatprep.subr.bf16.mxu1 %v417_v33 }
  0x98   : > { %2105 = vmatpush3.bf16.msra.mxu0 %v417_v33  ;;  %2176 = vmatpush3.bf16.msra.mxu1 %v417_v33 }
  0x99   : > { %2106 = vmatprep.subr.bf16.mxu0 %v416_v36  ;;  %2169 = vmatprep.subr.bf16.mxu1 %v416_v36  ;;  %v415_v43 = vpack.c.bf16 %v405_v37, %v404_v38 }
  0x9a   : > { %v362_v41 = vpop.permute.xlu1 %361  ;;  %v357_v42 = vpop.permute.xlu0 %356 }
  0x9b   : > { %v403_v44 = vmul.f32 %v362_v41, %v291_v39  ;;  %v402_v45 = vmul.f32 %v357_v42, %v290_v40 }
  0x9c   : > { %2107 = vmatpush3.bf16.msra.mxu0 %v416_v36  ;;  %2177 = vmatpush3.bf16.msra.mxu1 %v416_v36 }
  0x9d   : > { %2108 = vmatprep.subr.bf16.mxu0 %v415_v43  ;;  %2170 = vmatprep.subr.bf16.mxu1 %v415_v43  ;;  %v414_v50 = vpack.c.bf16 %v403_v44, %v402_v45 }
  0x9e   : > { %v352_v48 = vpop.permute.xlu1 %351  ;;  %v347_v49 = vpop.permute.xlu0 %346 }
  0x9f   : > { %v401_v51 = vmul.f32 %v352_v48, %v289_v46  ;;  %v400_v52 = vmul.f32 %v347_v49, %v288_v47 }
  0xa0   : > { %2109 = vmatpush3.bf16.msra.mxu0 %v415_v43  ;;  %2178 = vmatpush3.bf16.msra.mxu1 %v415_v43 }
  0xa1   : > { %2110 = vmatprep.subr.bf16.mxu0 %v414_v50  ;;  %2171 = vmatprep.subr.bf16.mxu1 %v414_v50  ;;  %v413_v57 = vpack.c.bf16 %v401_v51, %v400_v52 }
  0xa2   : > { %v342_v55 = vpop.permute.xlu1 %341  ;;  %v337_v56 = vpop.permute.xlu0 %336 }
  0xa3   : > { %v399_v58 = vmul.f32 %v342_v55, %v287_v53  ;;  %v398_v59 = vmul.f32 %v337_v56, %v286_v54 }
  0xa4   : > { %2111 = vmatpush3.bf16.msra.mxu0 %v414_v50  ;;  %2179 = vmatpush3.bf16.msra.mxu1 %v414_v50 }
  0xa5   : > { %2112 = vmatprep.subr.bf16.mxu0 %v413_v57  ;;  %2172 = vmatprep.subr.bf16.mxu1 %v413_v57  ;;  %v412_v0 = vpack.c.bf16 %v399_v58, %v398_v59 }
  0xa6   : > { %v332_v62 = vpop.permute.xlu1 %331  ;;  %v327_v63 = vpop.permute.xlu0 %326 }
  0xa7   : > { %v397_v1 = vmul.f32 %v332_v62, %v285_v60  ;;  %v396_v2 = vmul.f32 %v327_v63, %v284_v61 }
  0xa8   : > { %2113 = vmatpush3.bf16.msra.mxu0 %v413_v57  ;;  %2180 = vmatpush3.bf16.msra.mxu1 %v413_v57 }
  0xa9   : > { %2114 = vmatprep.subr.bf16.mxu0 %v412_v0  ;;  %2173 = vmatprep.subr.bf16.mxu1 %v412_v0  ;;  %v411_v7 = vpack.c.bf16 %v397_v1, %v396_v2 }
  0xaa   : > { %v322_v5 = vpop.permute.xlu1 %321  ;;  %v317_v6 = vpop.permute.xlu0 %316 }
  0xab   : > { %v395_v8 = vmul.f32 %v322_v5, %v283_v3  ;;  %v394_v9 = vmul.f32 %v317_v6, %v282_v4 }
  0xac   : > { %2115 = vmatpush3.bf16.msra.mxu0 %v412_v0  ;;  %2181 = vmatpush3.bf16.msra.mxu1 %v412_v0 }
  0xad   : > { %2116 = vmatprep.subr.bf16.mxu0 %v411_v7  ;;  %2174 = vmatprep.subr.bf16.mxu1 %v411_v7  ;;  %v410_v10 = vpack.c.bf16 %v395_v8, %v394_v9 }
  0xb0   : > { %2117 = vmatpush3.bf16.msra.mxu0 %v411_v7  ;;  %2182 = vmatpush3.bf16.msra.mxu1 %v411_v7 }
  0xb1   : > { %2118 = vmatprep.subr.bf16.mxu0 %v410_v10  ;;  %2175 = vmatprep.subr.bf16.mxu1 %v410_v10 }
  0xb4   : > { %2119 = vmatpush3.bf16.msra.mxu0 %v410_v10  ;;  %2183 = vmatpush3.bf16.msra.mxu1 %v410_v10 }
  0xb7   : > { %2121 = vmatmul.mubr.bf16.vlgmr.msra.gmra.mxu0 %v2214_v11  ;;  %2129 = vmatmul.mubr.bf16.vlgmr.msra.gmra.mxu1 %v2215_v12 }
  0xb8   : > { %2124 = vmatprep.mubr.bf16.mxu0 %v2216_v13  ;;  %2132 = vmatprep.mubr.bf16.mxu1 %v2218_v14 }
  0xbf   : > { %2125 = vmatmul.mubr.bf16.gmra.mxu0 %v2217_v15  ;;  %2133 = vmatmul.mubr.bf16.gmra.mxu1 %v2219_v16 }
 0x177   : > { %v2479_v17 = vpop.f32.mrf.mxu0  ;;  %v2481_v18 = vpop.f32.mrf.mxu1 }
 0x178   : > { %v626_v19 = vsel %vm595_vm0, %v2481_v18, 0.0  ;;  %v602_v20 = vsel %vm595_vm0, %v2479_v17, 0.0  ;;  %v662_v25 = vmul.f32 %v2479_v17, %v2479_v17  ;;  %v670_v29 = vmul.f32 %v2481_v18, %v2481_v18 }
 0x179   : > { %627 = vadd.xlane.f32.xlu1 %v626_v19  ;;  %603 = vadd.xlane.f32.xlu0 %v602_v20  ;;  %v2487_v21 = vpop.f32.mrf.mxu0  ;;  %v2489_v22 = vpop.f32.mrf.mxu1 }
 0x17a   : > { %v620_v23 = vsel %vm595_vm0, %v2489_v22, 0.0  ;;  %v596_v24 = vsel %vm595_vm0, %v2487_v21, 0.0  ;;  %v682_v27 = vsel %vm595_vm0, %v662_v25, 0.0  ;;  %v706_v31 = vsel %vm595_vm0, %v670_v29, 0.0 }
 0x17b   : > { %v2497_v26 = vpop.f32.mrf.mxu0  ;;  %v2504_v30 = vpop.f32.mrf.mxu1  ;;  %v660_v33 = vmul.f32 %v2487_v21, %v2487_v21  ;;  %v668_v37 = vmul.f32 %v2489_v22, %v2489_v22 }
 0x17c   : > { %v605_v28 = vsel %vm595_vm0, %v2497_v26, 0.0  ;;  %v629_v32 = vsel %vm595_vm0, %v2504_v30, 0.0  ;;  %v663_v38 = vmul.f32 %v2497_v26, %v2497_v26  ;;  %v671_v41 = vmul.f32 %v2504_v30, %v2504_v30 }
 0x17d   : > { %621 = vadd.xlane.f32.xlu1 %v620_v23  ;;  %597 = vadd.xlane.f32.xlu0 %v596_v24  ;;  %v2511_v34 = vpop.f32.mrf.mxu1  ;;  %v676_v35 = vsel %vm595_vm0, %v660_v33, 0.0  ;;  %v700_v39 = vsel %vm595_vm0, %v668_v37, 0.0  ;;  %v2524_v42 = vpop.f32.mrf.mxu0 }
 0x17e   : > { %v623_v36 = vsel %vm595_vm0, %v2511_v34, 0.0  ;;  %v685_v40 = vsel %vm595_vm0, %v663_v38, 0.0  ;;  %v709_v43 = vsel %vm595_vm0, %v671_v41, 0.0  ;;  %v599_v44 = vsel %vm595_vm0, %v2524_v42, 0.0 }
 0x17f   : > { %v661_v45 = vmul.f32 %v2524_v42, %v2524_v42  ;;  %v2531_v46 = vpop.f32.mrf.mxu0  ;;  %v669_v49 = vmul.f32 %v2511_v34, %v2511_v34  ;;  %v2538_v50 = vpop.f32.mrf.mxu1 }
 0x180   : > { %v614_v47 = vsel %vm595_vm0, %v2531_v46, 0.0  ;;  %v638_v51 = vsel %vm595_vm0, %v2538_v50, 0.0  ;;  %v666_v61 = vmul.f32 %v2531_v46, %v2531_v46  ;;  %v674_v1 = vmul.f32 %v2538_v50, %v2538_v50 }
 0x181   : > { %683 = vadd.xlane.f32.xlu1 %v682_v27  ;;  %606 = vadd.xlane.f32.xlu0 %v605_v28  ;;  %v679_v48 = vsel %vm595_vm0, %v661_v45, 0.0  ;;  %v2542_v52 = vpop.f32.mrf.mxu0  ;;  %v703_v53 = vsel %vm595_vm0, %v669_v49, 0.0  ;;  %v2547_v55 = vpop.f32.mrf.mxu1 }
 0x182   : > { %v608_v56 = vsel %vm595_vm0, %v2542_v52, 0.0  ;;  %v632_v59 = vsel %vm595_vm0, %v2547_v55, 0.0  ;;  %v694_v63 = vsel %vm595_vm0, %v666_v61, 0.0  ;;  %v718_v3 = vsel %vm595_vm0, %v674_v1, 0.0 }
 0x183   : > { %v2545_v54 = vpop.f32.mrf.mxu0  ;;  %v2553_v58 = vpop.f32.mrf.mxu1  ;;  %v664_v5 = vmul.f32 %v2542_v52, %v2542_v52  ;;  %v672_v10 = vmul.f32 %v2547_v55, %v2547_v55 }
 0x184   : > { %v617_v57 = vsel %vm595_vm0, %v2545_v54, 0.0  ;;  %v641_v60 = vsel %vm595_vm0, %v2553_v58, 0.0  ;;  %v667_v6 = vmul.f32 %v2545_v54, %v2545_v54  ;;  %v675_v15 = vmul.f32 %v2553_v58, %v2553_v58 }
 0x185   : > { %707 = vadd.xlane.f32.xlu1 %v706_v31  ;;  %630 = vadd.xlane.f32.xlu0 %v629_v32  ;;  %v2561_v62 = vpop.f32.mrf.mxu0  ;;  %v2568_v2 = vpop.f32.mrf.mxu1  ;;  %v688_v8 = vsel %vm595_vm0, %v664_v5, 0.0  ;;  %v712_v12 = vsel %vm595_vm0, %v672_v10, 0.0 }
 0x186   : > { %v611_v0 = vsel %vm595_vm0, %v2561_v62, 0.0  ;;  %v635_v4 = vsel %vm595_vm0, %v2568_v2, 0.0  ;;  %v665_v7 = vmul.f32 %v2561_v62, %v2561_v62  ;;  %v697_v9 = vsel %vm595_vm0, %v667_v6, 0.0 }
 0x187   : > { %v673_v11 = vmul.f32 %v2568_v2, %v2568_v2  ;;  %v721_v16 = vsel %vm595_vm0, %v675_v15, 0.0 }
 0x188   : > { %v691_v13 = vsel %vm595_vm0, %v665_v7, 0.0 }
 0x189   : > { %677 = vadd.xlane.f32.xlu1 %v676_v35  ;;  %624 = vadd.xlane.f32.xlu0 %v623_v36  ;;  %v715_v14 = vsel %vm595_vm0, %v673_v11, 0.0 }
 0x18d   : > { %701 = vadd.xlane.f32.xlu1 %v700_v39  ;;  %686 = vadd.xlane.f32.xlu0 %v685_v40 }
 0x191   : > { %710 = vadd.xlane.f32.xlu0 %v709_v43  ;;  %600 = vadd.xlane.f32.xlu1 %v599_v44 }
 0x195   : > { %680 = vadd.xlane.f32.xlu0 %v679_v48  ;;  %615 = vadd.xlane.f32.xlu1 %v614_v47 }
 0x199   : > { %704 = vadd.xlane.f32.xlu0 %v703_v53  ;;  %639 = vadd.xlane.f32.xlu1 %v638_v51 }
 0x19d   : > { %609 = vadd.xlane.f32.xlu1 %v608_v56  ;;  %618 = vadd.xlane.f32.xlu0 %v617_v57 }
 0x1a1   : > { %633 = vadd.xlane.f32.xlu1 %v632_v59  ;;  %642 = vadd.xlane.f32.xlu0 %v641_v60 }
 0x1a5   : > { %695 = vadd.xlane.f32.xlu1 %v694_v63  ;;  %612 = vadd.xlane.f32.xlu0 %v611_v0 }
 0x1a9   : > { %719 = vadd.xlane.f32.xlu1 %v718_v3  ;;  %636 = vadd.xlane.f32.xlu0 %v635_v4 }
 0x1ad   : > { %689 = vadd.xlane.f32.xlu1 %v688_v8  ;;  %698 = vadd.xlane.f32.xlu0 %v697_v9 }
 0x1b1   : > { %713 = vadd.xlane.f32.xlu1 %v712_v12  ;;  %692 = vadd.xlane.f32.xlu0 %v691_v13 }
 0x1b5   : > { %716 = vadd.xlane.f32.xlu0 %v715_v14 }
 0x1b9   : > { %722 = vadd.xlane.f32.xlu0 %v721_v16 }
 0x202   : > { %v628_v19 = vpop.xlane.xlu1 %627  ;;  %v604_v20 = vpop.xlane.xlu0 %603 }
 0x203   : > { %v2591_v25 = vmul.f32 0.015625, %v604_v20  ;;  %v2593_v29 = vmul.f32 0.015625, %v628_v19 }
 0x205   : > { %v742_v31 = vmul.f32 %v2591_v25, %v2591_v25  ;;  %v750_v37 = vmul.f32 %v2593_v29, %v2593_v29 }
 0x206   : > { %v622_v23 = vpop.xlane.xlu1 %621  ;;  %v598_v24 = vpop.xlane.xlu0 %597 }
 0x207   : > { %v2599_v38 = vmul.f32 0.015625, %v598_v24  ;;  %v2601_v44 = vmul.f32 0.015625, %v622_v23 }
 0x209   : > { %v740_v49 = vmul.f32 %v2599_v38, %v2599_v38  ;;  %v748_v59 = vmul.f32 %v2601_v44, %v2601_v44 }
 0x20a   : > { %v684_v27 = vpop.xlane.xlu1 %683  ;;  %v607_v28 = vpop.xlane.xlu0 %606 }
 0x20b   : > { %v726_v32 = vmul.f32 0.015625, %v684_v27  ;;  %v2603_v45 = vmul.f32 0.015625, %v607_v28  ;;  %v790_v27 = vld [vmem:[%s2367_s7 + $0x10] sm:$0xff] }
 0x20d   : > { %v758_v33 = vsub.f32 %v726_v32, %v742_v31  ;;  %v743_v60 = vmul.f32 %v2603_v45, %v2603_v45 }
 0x20e   : > { %v708_v35 = vpop.xlane.xlu1 %707  ;;  %v631_v36 = vpop.xlane.xlu0 %630 }
 0x20f   : > { %v774_v39 = vmax.f32 %v758_v33, 0.0  ;;  %v734_v40 = vmul.f32 0.015625, %v708_v35  ;;  %v2611_v61 = vmul.f32 0.015625, %v631_v36 }
 0x211   : > { %v806_v41 = vadd.f32 1e-05, %v774_v39  ;;  %v766_v43 = vsub.f32 %v734_v40, %v750_v37  ;;  %v751_v8 = vmul.f32 %v2611_v61, %v2611_v61 }
 0x212   : > { %v678_v47 = vpop.xlane.xlu1 %677  ;;  %v625_v48 = vpop.xlane.xlu0 %624 }
 0x213   : > { %2220 = vrsqrt.f32 %v806_v41  ;;  %v782_v51 = vmax.f32 %v766_v43, 0.0  ;;  %v724_v53 = vmul.f32 0.015625, %v678_v47  ;;  %v2617_v20 = vmul.f32 0.015625, %v625_v48  ;;  %v798_v41 = vld [vmem:[%s2367_s7 + $0x50] sm:$0xff] }
 0x215   : > { %v814_v56 = vadd.f32 1e-05, %v782_v51  ;;  %v756_v57 = vsub.f32 %v724_v53, %v740_v49  ;;  %v749_v43 = vmul.f32 %v2617_v20, %v2617_v20 }
 0x216   : > { %v702_v63 = vpop.xlane.xlu1 %701  ;;  %v687_v0 = vpop.xlane.xlu0 %686 }
 0x217   : > { %2222 = vrsqrt.f32 %v814_v56  ;;  %v772_v1 = vmax.f32 %v756_v57, 0.0  ;;  %v732_v3 = vmul.f32 0.015625, %v702_v63  ;;  %v727_v4 = vmul.f32 0.015625, %v687_v0 }
 0x219   : > { %v804_v5 = vadd.f32 1e-05, %v772_v1  ;;  %v764_v6 = vsub.f32 %v732_v3, %v748_v59  ;;  %v759_v7 = vsub.f32 %v727_v4, %v743_v60  ;;  %v788_v60 = vld [vmem:[%s2367_s7] sm:$0xff] }
 0x21a   : > { %v711_v9 = vpop.xlane.xlu0 %710  ;;  %v601_v10 = vpop.xlane.xlu1 %600 }
 0x21b   : > { %2224 = vrsqrt.f32 %v804_v5  ;;  %v780_v11 = vmax.f32 %v764_v6, 0.0  ;;  %v775_v12 = vmax.f32 %v759_v7, 0.0  ;;  %v735_v13 = vmul.f32 0.015625, %v711_v9  ;;  %v796_v6 = vld [vmem:[%s2367_s7 + $0x40] sm:$0xff] }
 0x21c   : > { %v2615_v14 = vmul.f32 0.015625, %v601_v10 }
 0x21d   : > { %v812_v15 = vadd.f32 1e-05, %v780_v11  ;;  %v807_v16 = vadd.f32 1e-05, %v775_v12  ;;  %v767_v19 = vsub.f32 %v735_v13, %v751_v8  ;;  %v791_v8 = vld [vmem:[%s2367_s7 + $0x18] sm:$0xff] }
 0x21e   : > { %v681_v23 = vpop.xlane.xlu0 %680  ;;  %v616_v24 = vpop.xlane.xlu1 %615  ;;  %v741_v31 = vmul.f32 %v2615_v14, %v2615_v14 }
 0x21f   : > { %2226 = vrsqrt.f32 %v812_v15  ;;  %v783_v28 = vmax.f32 %v767_v19, 0.0  ;;  %v725_v32 = vmul.f32 0.015625, %v681_v23  ;;  %v2629_v7 = vmul.f32 0.015625, %v616_v24  ;;  %v799_v19 = vld [vmem:[%s2367_s7 + $0x58] sm:$0xff]  ;;  %v854_v23 = vld [vmem:[%s2372_s10 + $0x10] sm:$0xff] }
 0x220   : > { %v2221_v33 = vpop.eup %2220  ;;  %2228 = vrsqrt.f32 %v807_v16 }
 0x221   : > { %v815_v35 = vadd.f32 1e-05, %v783_v28  ;;  %v757_v36 = vsub.f32 %v725_v32, %v741_v31  ;;  %v838_v37 = vmul.f32 %v2221_v33, %v790_v27  ;;  %v746_v27 = vmul.f32 %v2629_v7, %v2629_v7 }
 0x222   : > { %v705_v39 = vpop.xlane.xlu0 %704  ;;  %v640_v40 = vpop.xlane.xlu1 %639 }
 0x223   : > { %2230 = vrsqrt.f32 %v815_v35  ;;  %v773_v47 = vmax.f32 %v757_v36, 0.0  ;;  %v733_v48 = vmul.f32 0.015625, %v705_v39  ;;  %912 = vperm.xlu1 %2211, %v838_v37   ;;  %v870_v12 = vmul.f32 %v838_v37, %v2591_v25 }
 0x224   : > { %v2223_v49 = vpop.eup %2222  ;;  %v2639_v24 = vmul.f32 0.015625, %v640_v40 }
 0x225   : > { %v805_v51 = vadd.f32 1e-05, %v773_v47  ;;  %v765_v53 = vsub.f32 %v733_v48, %v749_v43  ;;  %v846_v56 = vmul.f32 %v2223_v49, %v798_v41  ;;  %v886_v35 = vsub.f32 %v854_v23, %v870_v12  ;;  %v862_v43 = vld [vmem:[%s2372_s10 + $0x50] sm:$0xff] }
 0x226   : > { %v610_v57 = vpop.xlane.xlu1 %609  ;;  %v619_v59 = vpop.xlane.xlu0 %618  ;;  %v754_v40 = vmul.f32 %v2639_v24, %v2639_v24 }
 0x227   : > { %v781_v63 = vmax.f32 %v765_v53, 0.0  ;;  %952 = vperm.xlu0 %2210, %v846_v56   ;;  %2232 = vrsqrt.f32 %v805_v51  ;;  %v878_v25 = vmul.f32 %v846_v56, %v2593_v29  ;;  %v2643_v36 = vmul.f32 0.015625, %v610_v57  ;;  %v789_v29 = vld [vmem:[%s2367_s7 + $0x8] sm:$0xff] }
 0x228   : > { %v2225_v0 = vpop.eup %2224  ;;  %v2645_v37 = vmul.f32 0.015625, %v619_v59 }
 0x229   : > { %v813_v1 = vadd.f32 1e-05, %v781_v63  ;;  %v836_v3 = vmul.f32 %v2225_v0, %v788_v60  ;;  %v894_v60 = vsub.f32 %v862_v43, %v878_v25  ;;  %v744_v56 = vmul.f32 %v2643_v36, %v2643_v36 }
 0x22a   : > { %v634_v4 = vpop.xlane.xlu1 %633  ;;  %v2626_v5 = vpop.xlane.xlu0 %642  ;;  %v747_v57 = vmul.f32 %v2645_v37, %v2645_v37 }
 0x22b   : > { %2234 = vrsqrt.f32 %v813_v1  ;;  %902 = vperm.xlu1 %2211, %v836_v3   ;;  %v2655_v59 = vmul.f32 0.015625, %v634_v4  ;;  %v797_v1 = vld [vmem:[%s2367_s7 + $0x48] sm:$0xff] }
 0x22c   : > { %v2227_v9 = vpop.eup %2226 }
 0x22d   : > { %v2229_v10 = vpop.eup %2228  ;;  %v2632_v11 = vmul.f32 %v2227_v9, %v796_v6 }
 0x22e   : > { %v696_v13 = vpop.xlane.xlu1 %695  ;;  %v613_v15 = vpop.xlane.xlu0 %612  ;;  %v839_v16 = vmul.f32 %v2229_v10, %v791_v8 }
 0x22f   : > { %v730_v28 = vmul.f32 0.015625, %v696_v13  ;;  %942 = vperm.xlu0 %2210, %v2632_v11   ;;  %v2664_v25 = vmul.f32 0.015625, %v613_v15 }
 0x230   : > { %v2231_v31 = vpop.eup %2230  ;;  %917 = vperm.xlu1 %2211, %v839_v16   ;;  %v871_v13 = vmul.f32 %v839_v16, %v2603_v45 }
 0x231   : > { %v762_v32 = vsub.f32 %v730_v28, %v746_v27  ;;  %v847_v33 = vmul.f32 %v2231_v31, %v799_v19  ;;  %v868_v19 = vmul.f32 %v836_v3, %v2599_v38  ;;  %v855_v31 = vld [vmem:[%s2372_s10 + $0x18] sm:$0xff] }
 0x232   : > { %v720_v39 = vpop.xlane.xlu1 %719  ;;  %v637_v41 = vpop.xlane.xlu0 %636  ;;  %v887_v38 = vsub.f32 %v855_v31, %v871_v13 }
 0x233   : > { %v778_v47 = vmax.f32 %v762_v32, 0.0  ;;  %v738_v48 = vmul.f32 0.015625, %v720_v39  ;;  %1008 = vperm.xlu0 %2210, %v886_v35   ;;  %v852_v32 = vld [vmem:[%s2372_s10] sm:$0xff]  ;;  %v752_v35 = vmul.f32 %v2655_v59, %v2655_v59 }
 0x234   : > { %957 = vperm.xlu1 %2211, %v847_v33   ;;  %v2233_v49 = vpop.eup %2232  ;;  %v884_v3 = vsub.f32 %v852_v32, %v868_v19 }
 0x235   : > { %v810_v51 = vadd.f32 1e-05, %v778_v47  ;;  %v770_v53 = vsub.f32 %v738_v48, %v754_v40  ;;  %v837_v12 = vmul.f32 %v2233_v49, %v789_v29  ;;  %v879_v47 = vmul.f32 %v847_v33, %v2611_v61 }
 0x236   : > { %v690_v63 = vpop.xlane.xlu1 %689  ;;  %v699_v0 = vpop.xlane.xlu0 %698  ;;  %v876_v48 = vmul.f32 %v2632_v11, %v2601_v44  ;;  %v2671_v29 = vmul.f32 0.015625, %v2626_v5 }
 0x237   : > { %2236 = vrsqrt.f32 %v810_v51  ;;  %v786_v6 = vmax.f32 %v770_v53, 0.0  ;;  %v728_v8 = vmul.f32 0.015625, %v690_v63  ;;  %v731_v9 = vmul.f32 0.015625, %v699_v0  ;;  %1048 = vperm.xlu0 %2210, %v894_v60   ;;  %v860_v60 = vld [vmem:[%s2372_s10 + $0x40] sm:$0xff] }
 0x238   : > { %v2235_v10 = vpop.eup %2234  ;;  %v745_v63 = vmul.f32 %v2664_v25, %v2664_v25  ;;  %v2676_v0 = vmul.f32 0.015625, %v637_v41  ;;  %v892_v44 = vsub.f32 %v860_v60, %v876_v48  ;;  %v869_v11 = vmul.f32 %v837_v12, %v2615_v14  ;;  %v792_v48 = vld [vmem:[%s2367_s7 + $0x20] sm:$0xff] }
 0x239   : > { %v818_v23 = vadd.f32 1e-05, %v786_v6  ;;  %v760_v27 = vsub.f32 %v728_v8, %v744_v56  ;;  %v763_v4 = vsub.f32 %v731_v9, %v747_v57  ;;  %v845_v28 = vmul.f32 %v2235_v10, %v797_v1  ;;  %v863_v57 = vld [vmem:[%s2372_s10 + $0x58] sm:$0xff]  ;;  %v853_v8 = vld [vmem:[%s2372_s10 + $0x8] sm:$0xff]  ;;  %v794_v10 = vld [vmem:[%s2367_s7 + $0x30] sm:$0xff] }
 0x23a   : > { %v714_v39 = vpop.xlane.xlu1 %713  ;;  %v693_v43 = vpop.xlane.xlu0 %692  ;;  %v895_v6 = vsub.f32 %v863_v57, %v879_v47  ;;  %v755_v41 = vmul.f32 %v2671_v29, %v2671_v29  ;;  %v753_v13 = vmul.f32 %v2676_v0, %v2676_v0  ;;  %v800_v60 = vld [vmem:[%s2367_s7 + $0x60] sm:$0xff] }
 0x23b   : > { %2238 = vrsqrt.f32 %v818_v23  ;;  %v776_v40 = vmax.f32 %v760_v27, 0.0  ;;  %v779_v45 = vmax.f32 %v763_v4, 0.0  ;;  %v736_v16 = vmul.f32 0.015625, %v714_v39  ;;  %947 = vperm.xlu1 %2211, %v845_v28   ;;  %907 = vperm.xlu0 %2210, %v837_v12   ;;  %v802_v39 = vld [vmem:[%s2367_s7 + $0x70] sm:$0xff] }
 0x23c   : > { %v729_v53 = vmul.f32 0.015625, %v693_v43  ;;  %v885_v12 = vsub.f32 %v853_v8, %v869_v11  ;;  %v877_v23 = vmul.f32 %v845_v28, %v2617_v20  ;;  %v795_v20 = vld [vmem:[%s2367_s7 + $0x38] sm:$0xff] }
 0x23d   : > { %v808_v49 = vadd.f32 1e-05, %v776_v40  ;;  %v811_v15 = vadd.f32 1e-05, %v779_v45  ;;  %v768_v51 = vsub.f32 %v736_v16, %v752_v35  ;;  %v861_v35 = vld [vmem:[%s2372_s10 + $0x48] sm:$0xff] }
 0x23e   : > { %v717_v56 = vpop.xlane.xlu0 %716  ;;  %v761_v5 = vsub.f32 %v729_v53, %v745_v63  ;;  %v893_v45 = vsub.f32 %v861_v35, %v877_v23  ;;  %v801_v23 = vld [vmem:[%s2367_s7 + $0x68] sm:$0xff] }
 0x23f   : > { %2240 = vrsqrt.f32 %v808_v49  ;;  %v784_v61 = vmax.f32 %v768_v51, 0.0  ;;  %1013 = vperm.xlu1 %2211, %v887_v38   ;;  %998 = vperm.xlu0 %2210, %v884_v3   ;;  %v737_v1 = vmul.f32 0.015625, %v717_v56 }
 0x240   : > { %2242 = vrsqrt.f32 %v811_v15  ;;  %v777_v27 = vmax.f32 %v761_v5, 0.0  ;;  %v803_v5 = vld [vmem:[%s2367_s7 + $0x78] sm:$0xff] }
 0x241   : > { %v816_v33 = vadd.f32 1e-05, %v784_v61  ;;  %v769_v4 = vsub.f32 %v737_v1, %v753_v13  ;;  %v858_v61 = vld [vmem:[%s2372_s10 + $0x30] sm:$0xff]  ;;  %v793_v13 = vld [vmem:[%s2367_s7 + $0x28] sm:$0xff] }
 0x242   : > { %v723_v9 = vpop.xlane.xlu0 %722  ;;  %v809_v16 = vadd.f32 1e-05, %v777_v27 }
 0x243   : > { %2244 = vrsqrt.f32 %v816_v33  ;;  %v739_v19 = vmul.f32 0.015625, %v723_v9  ;;  %1053 = vperm.xlu1 %2211, %v895_v6   ;;  %1038 = vperm.xlu0 %2210, %v892_v44   ;;  %v785_v38 = vmax.f32 %v769_v4, 0.0  ;;  %v856_v33 = vld [vmem:[%s2372_s10 + $0x20] sm:$0xff] }
 0x244   : > { %v2237_v14 = vpop.eup %2236 }
 0x245   : > { %v771_v31 = vsub.f32 %v739_v19, %v755_v41  ;;  %v842_v32 = vmul.f32 %v2237_v14, %v794_v10  ;;  %v817_v15 = vadd.f32 1e-05, %v785_v38  ;;  %v864_v41 = vld [vmem:[%s2372_s10 + $0x60] sm:$0xff]  ;;  %v867_v38 = vld [vmem:[%s2372_s10 + $0x78] sm:$0xff] }
 0x247   : > { %v787_v43 = vmax.f32 %v771_v31, 0.0  ;;  %1003 = vperm.xlu1 %2211, %v885_v12   ;;  %932 = vperm.xlu0 %2210, %v842_v32   ;;  %v874_v63 = vmul.f32 %v842_v32, %v2629_v7  ;;  %v866_v12 = vld [vmem:[%s2372_s10 + $0x70] sm:$0xff]  ;;  %v859_v31 = vld [vmem:[%s2372_s10 + $0x38] sm:$0xff] }
 0x248   : > { %v2239_v40 = vpop.eup %2238 }
 0x249   : > { %v819_v3 = vadd.f32 1e-05, %v787_v43  ;;  %v850_v47 = vmul.f32 %v2239_v40, %v802_v39  ;;  %v890_v44 = vsub.f32 %v858_v61, %v874_v63  ;;  %v857_v39 = vld [vmem:[%s2372_s10 + $0x28] sm:$0xff] }
 0x24a   : > { %v865_v40 = vld [vmem:[%s2372_s10 + $0x68] sm:$0xff] }
 0x24b   : > { %2246 = vrsqrt.f32 %v819_v3  ;;  %1043 = vperm.xlu1 %2211, %v893_v45   ;;  %972 = vperm.xlu0 %2210, %v850_v47  }
 0x24c   : > { %v2241_v28 = vpop.eup %2240  ;;  %2248 = vrsqrt.f32 %v809_v16 }
 0x24d   : > { %v2243_v49 = vpop.eup %2242  ;;  %v840_v51 = vmul.f32 %v2241_v28, %v792_v48  ;;  %2250 = vrsqrt.f32 %v817_v15 }
 0x24e   : > { %v843_v53 = vmul.f32 %v2243_v49, %v795_v20 }
 0x24f   : > { %922 = vperm.xlu0 %2210, %v840_v51   ;;  %v872_v11 = vmul.f32 %v840_v51, %v2643_v36  ;;  %v882_v36 = vmul.f32 %v850_v47, %v2639_v24 }
 0x250   : > { %v2245_v56 = vpop.eup %2244  ;;  %937 = vperm.xlu1 %2211, %v843_v53   ;;  %v875_v4 = vmul.f32 %v843_v53, %v2645_v37 }
 0x251   : > { %v848_v57 = vmul.f32 %v2245_v56, %v800_v60  ;;  %v888_v6 = vsub.f32 %v856_v33, %v872_v11  ;;  %v898_v27 = vsub.f32 %v866_v12, %v882_v36  ;;  %v589_v60 = vld [vmem:[%s3119_s2 + $0x50] sm:$0xff]  ;;  %v590_v36 = vld [vmem:[%s3119_s2 + $0x58] sm:$0xff]  ;;  %v587_v12 = vld [vmem:[%s3119_s2 + $0x40] sm:$0xff] }
 0x252   : > { %v891_v32 = vsub.f32 %v859_v31, %v875_v4 }
 0x253   : > { %962 = vperm.xlu0 %2210, %v848_v57   ;;  %v880_v9 = vmul.f32 %v848_v57, %v2655_v59 }
 0x255   : > { %v896_v7 = vsub.f32 %v864_v41, %v880_v9  ;;  %v579_v9 = vld [vmem:[%s3119_s2] sm:$0xff] }
 0x257   : > { %1028 = vperm.xlu0 %2210, %v890_v44  }
 0x258   : > { %v2247_v1 = vpop.eup %2246 }
 0x259   : > { %v851_v8 = vmul.f32 %v2247_v1, %v803_v5  ;;  %v2249_v10 = vpop.eup %2248 }
 0x25a   : > { %v841_v19 = vmul.f32 %v2249_v10, %v793_v13  ;;  %v2251_v14 = vpop.eup %2250 }
 0x25b   : > { %1018 = vperm.xlu0 %2210, %v888_v6   ;;  %977 = vperm.xlu1 %2211, %v851_v8   ;;  %v849_v59 = vmul.f32 %v2251_v14, %v801_v23  ;;  %v883_v16 = vmul.f32 %v851_v8, %v2671_v29  ;;  %v582_v6 = vld [vmem:[%s3119_s2 + $0x18] sm:$0xff] }
 0x25c   : > { %v873_v35 = vmul.f32 %v841_v19, %v2664_v25 }
 0x25d   : > { %v881_v43 = vmul.f32 %v849_v59, %v2676_v0  ;;  %v899_v3 = vsub.f32 %v867_v38, %v883_v16  ;;  %v581_v0 = vld [vmem:[%s3119_s2 + $0x10] sm:$0xff] }
 0x25e   : > { %v889_v24 = vsub.f32 %v857_v39, %v873_v35 }
 0x25f   : > { %1058 = vperm.xlu0 %2210, %v896_v7   ;;  %927 = vperm.xlu1 %2211, %v841_v19   ;;  %v897_v45 = vsub.f32 %v865_v40, %v881_v43 }
 0x263   : > { %1068 = vperm.xlu0 %2210, %v898_v27   ;;  %967 = vperm.xlu1 %2211, %v849_v59  }
 0x267   : > { %1033 = vperm.xlu1 %2211, %v891_v32  }
 0x26b   : > { %1023 = vperm.xlu1 %2211, %v889_v24   ;;  %v580_v24 = vld [vmem:[%s3119_s2 + $0x8] sm:$0xff] }
 0x26f   : > { %1063 = vperm.xlu1 %2211, %v897_v45  }
 0x273   : > { %1073 = vperm.xlu1 %2211, %v899_v3  }
 0x29e   : > { %v913_v37 = vpop.permute.xlu1 %912 }
 0x29f   : > { %v982_v25 = vmul.f32 %v2479_v17, %v913_v37 }
 0x2a2   : > { %v953_v47 = vpop.permute.xlu0 %952 }
 0x2a3   : > { %v990_v51 = vmul.f32 %v2481_v18, %v953_v47 }
 0x2a6   : > { %v903_v48 = vpop.permute.xlu1 %902 }
 0x2a7   : > { %v980_v5 = vmul.f32 %v903_v48, %v2487_v21  ;;  %v588_v48 = vld [vmem:[%s3119_s2 + $0x48] sm:$0xff] }
 0x2aa   : > { %v943_v20 = vpop.permute.xlu0 %942 }
 0x2ab   : > { %v918_v28 = vpop.permute.xlu1 %917  ;;  %v988_v7 = vmul.f32 %v943_v20, %v2489_v22 }
 0x2ac   : > { %v983_v18 = vmul.f32 %v2497_v26, %v918_v28 }
 0x2ae   : > { %v1009_v49 = vpop.permute.xlu0 %1008 }
 0x2af   : > { %v1078_v15 = vadd.f32 %v1009_v49, %v982_v25  ;;  %v958_v53 = vpop.permute.xlu1 %957 }
 0x2b0   : > { %v991_v21 = vmul.f32 %v2504_v30, %v958_v53 }
 0x2b1   : > { %v1094_v29 = vadd.f32 %v1078_v15, %v581_v0 }
 0x2b2   : > { %v1049_v56 = vpop.permute.xlu0 %1048 }
 0x2b3   : > { %v1110_v57 = vmax.f32 %v1094_v29, 0.0  ;;  %v1086_v63 = vadd.f32 %v1049_v56, %v990_v51 }
 0x2b5   : > { %v2058_v61 = vpack.c.bf16 %v1110_v57, %v1110_v57  ;;  %v1102_v17 = vadd.f32 %v1086_v63, %v589_v60  ;;  %v585_v57 = vld [vmem:[%s3119_s2 + $0x30] sm:$0xff] }
 0x2b6   : > { %v948_v44 = vpop.permute.xlu1 %947  ;;  %v908_v11 = vpop.permute.xlu0 %907 }
 0x2b7   : > { %1191 = vst.msk [vmem:[#allocation2 + $0x8] sm:$0xf] %vm1188_vm1, %v2058_v61  ;;  %v1118_v33 = vmax.f32 %v1102_v17, 0.0  ;;  %v981_v22 = vmul.f32 %v908_v11, %v2524_v42  ;;  %v989_v3 = vmul.f32 %v948_v44, %v2511_v34 }
 0x2b9   : > { %v2066_v1 = vpack.c.bf16 %v1118_v33, %v1118_v33  ;;  %v583_v33 = vld [vmem:[%s3119_s2 + $0x20] sm:$0xff] }
 0x2ba   : > { %v1014_v8 = vpop.permute.xlu1 %1013  ;;  %v999_v10 = vpop.permute.xlu0 %998 }
 0x2bb   : > { %1199 = vst.msk [vmem:[#allocation2 + $0x28] sm:$0xf] %vm1188_vm1, %v2066_v1  ;;  %v1079_v41 = vadd.f32 %v1014_v8, %v983_v18  ;;  %v1076_v13 = vadd.f32 %v999_v10, %v980_v5  ;;  %v591_v10 = vld [vmem:[%s3119_s2 + $0x60] sm:$0xff] }
 0x2bd   : > { %v1095_v26 = vadd.f32 %v1079_v41, %v582_v6  ;;  %v1092_v19 = vadd.f32 %v1076_v13, %v579_v9 }
 0x2be   : > { %v1054_v14 = vpop.permute.xlu1 %1053  ;;  %v1039_v23 = vpop.permute.xlu0 %1038 }
 0x2bf   : > { %v1111_v27 = vmax.f32 %v1095_v26, 0.0  ;;  %v1108_v59 = vmax.f32 %v1092_v19, 0.0  ;;  %v1087_v4 = vadd.f32 %v1054_v14, %v991_v21  ;;  %v1084_v31 = vadd.f32 %v1039_v23, %v988_v7 }
 0x2c1   : > { %v2059_v32 = vpack.c.bf16 %v1111_v27, %v1111_v27  ;;  %v2056_v30 = vpack.c.bf16 %v1108_v59, %v1108_v59  ;;  %v1103_v35 = vadd.f32 %v1087_v4, %v590_v36  ;;  %v1100_v39 = vadd.f32 %v1084_v31, %v587_v12 }
 0x2c2   : > { %v1004_v43 = vpop.permute.xlu1 %1003  ;;  %v933_v40 = vpop.permute.xlu0 %932 }
 0x2c3   : > { %1192 = vst.msk [vmem:[#allocation2 + $0xc] sm:$0xf] %vm1188_vm1, %v2059_v32  ;;  %1189 = vst.msk [vmem:[#allocation2] sm:$0xf] %vm1188_vm1, %v2056_v30  ;;  %v1119_v45 = vmax.f32 %v1103_v35, 0.0  ;;  %v1116_v16 = vmax.f32 %v1100_v39, 0.0  ;;  %v1077_v38 = vadd.f32 %v1004_v43, %v981_v22  ;;  %v986_v60 = vmul.f32 %v2531_v46, %v933_v40 }
 0x2c4   : > { %v584_v39 = vld [vmem:[%s3119_s2 + $0x28] sm:$0xff] }
 0x2c5   : > { %v2067_v42 = vpack.c.bf16 %v1119_v45, %v1119_v45  ;;  %v2064_v37 = vpack.c.bf16 %v1116_v16, %v1116_v16  ;;  %v1093_v47 = vadd.f32 %v1077_v38, %v580_v24  ;;  %v592_v38 = vld [vmem:[%s3119_s2 + $0x68] sm:$0xff] }
 0x2c6   : > { %v1044_v20 = vpop.permute.xlu1 %1043  ;;  %v973_v28 = vpop.permute.xlu0 %972 }
 0x2c7   : > { %1200 = vst.msk [vmem:[#allocation2 + $0x2c] sm:$0xf] %vm1188_vm1, %v2067_v42  ;;  %1197 = vst.msk [vmem:[#allocation2 + $0x20] sm:$0xf] %vm1188_vm1, %v2064_v37  ;;  %v1109_v25 = vmax.f32 %v1093_v47, 0.0  ;;  %v1085_v0 = vadd.f32 %v1044_v20, %v989_v3  ;;  %v994_v7 = vmul.f32 %v2538_v50, %v973_v28  ;;  %v586_v50 = vld [vmem:[%s3119_s2 + $0x38] sm:$0xff] }
 0x2c8   : > { %v594_v20 = vld [vmem:[%s3119_s2 + $0x78] sm:$0xff] }
 0x2c9   : > { %v2057_v49 = vpack.c.bf16 %v1109_v25, %v1109_v25  ;;  %v1101_v15 = vadd.f32 %v1085_v0, %v588_v48 }
 0x2ca   : > { %v923_v51 = vpop.permute.xlu0 %922 }
 0x2cb   : > { %1190 = vst.msk [vmem:[#allocation2 + $0x4] sm:$0xf] %vm1188_vm1, %v2057_v49  ;;  %v1117_v34 = vmax.f32 %v1101_v15, 0.0  ;;  %v938_v56 = vpop.permute.xlu1 %937  ;;  %v984_v17 = vmul.f32 %v923_v51, %v2542_v52 }
 0x2cc   : > { %v987_v23 = vmul.f32 %v2545_v54, %v938_v56 }
 0x2cd   : > { %v2065_v29 = vpack.c.bf16 %v1117_v34, %v1117_v34 }
 0x2ce   : > { %v963_v53 = vpop.permute.xlu0 %962 }
 0x2cf   : > { %1198 = vst.msk [vmem:[#allocation2 + $0x24] sm:$0xf] %vm1188_vm1, %v2065_v29  ;;  %v992_v46 = vmul.f32 %v963_v53, %v2547_v55  ;;  %v593_v55 = vld [vmem:[%s3119_s2 + $0x70] sm:$0xff] }
 0x2d2   : > { %v1029_v63 = vpop.permute.xlu0 %1028 }
 0x2d3   : > { %v1082_v61 = vadd.f32 %v1029_v63, %v986_v60 }
 0x2d5   : > { %v1098_v44 = vadd.f32 %v1082_v61, %v585_v57 }
 0x2d6   : > { %v978_v11 = vpop.permute.xlu1 %977  ;;  %v1019_v5 = vpop.permute.xlu0 %1018 }
 0x2d7   : > { %v1114_v18 = vmax.f32 %v1098_v44, 0.0  ;;  %v1080_v1 = vadd.f32 %v1019_v5, %v984_v17  ;;  %v995_v37 = vmul.f32 %v2553_v58, %v978_v11 }
 0x2d9   : > { %v2062_v6 = vpack.c.bf16 %v1114_v18, %v1114_v18  ;;  %v1096_v8 = vadd.f32 %v1080_v1, %v583_v33 }
 0x2da   : > { %v928_v9 = vpop.permute.xlu1 %927  ;;  %v1059_v41 = vpop.permute.xlu0 %1058 }
 0x2db   : > { %1195 = vst.msk [vmem:[#allocation2 + $0x18] sm:$0xf] %vm1188_vm1, %v2062_v6  ;;  %v1112_v52 = vmax.f32 %v1096_v8, 0.0  ;;  %v1088_v13 = vadd.f32 %v1059_v41, %v992_v46  ;;  %v985_v32 = vmul.f32 %v928_v9, %v2561_v62 }
 0x2dd   : > { %v2060_v21 = vpack.c.bf16 %v1112_v52, %v1112_v52  ;;  %v1104_v26 = vadd.f32 %v1088_v13, %v591_v10 }
 0x2de   : > { %v968_v19 = vpop.permute.xlu1 %967  ;;  %v1069_v36 = vpop.permute.xlu0 %1068 }
 0x2df   : > { %1193 = vst.msk [vmem:[#allocation2 + $0x10] sm:$0xf] %vm1188_vm1, %v2060_v21  ;;  %v1120_v14 = vmax.f32 %v1104_v26, 0.0  ;;  %v1090_v12 = vadd.f32 %v1069_v36, %v994_v7  ;;  %v993_v40 = vmul.f32 %v968_v19, %v2568_v2 }
 0x2e1   : > { %v2068_v27 = vpack.c.bf16 %v1120_v14, %v1120_v14  ;;  %v1106_v59 = vadd.f32 %v1090_v12, %v593_v55 }
 0x2e2   : > { %v1034_v4 = vpop.permute.xlu1 %1033 }
 0x2e3   : > { %1201 = vst.msk [vmem:[#allocation2 + $0x30] sm:$0xf] %vm1188_vm1, %v2068_v27  ;;  %v1122_v31 = vmax.f32 %v1106_v59, 0.0  ;;  %v1083_v22 = vadd.f32 %v1034_v4, %v987_v23 }
 0x2e5   : > { %v2070_v30 = vpack.c.bf16 %v1122_v31, %v1122_v31  ;;  %v1099_v35 = vadd.f32 %v1083_v22, %v586_v50 }
 0x2e6   : > { %v1024_v54 = vpop.permute.xlu1 %1023 }
 0x2e7   : > { %1203 = vst.msk [vmem:[#allocation2 + $0x38] sm:$0xf] %vm1188_vm1, %v2070_v30  ;;  %v1115_v24 = vmax.f32 %v1099_v35, 0.0  ;;  %v1081_v43 = vadd.f32 %v1024_v54, %v985_v32 }
 0x2e9   : > { %v2063_v45 = vpack.c.bf16 %v1115_v24, %v1115_v24  ;;  %v1097_v16 = vadd.f32 %v1081_v43, %v584_v39 }
 0x2ea   : > { %v1064_v62 = vpop.permute.xlu1 %1063 }
 0x2eb   : > { %1196 = vst.msk [vmem:[#allocation2 + $0x1c] sm:$0xf] %vm1188_vm1, %v2063_v45  ;;  %v1113_v3 = vmax.f32 %v1097_v16, 0.0  ;;  %v1089_v42 = vadd.f32 %v1064_v62, %v993_v40 }
 0x2ed   : > { %v2061_v47 = vpack.c.bf16 %v1113_v3, %v1113_v3  ;;  %v1105_v48 = vadd.f32 %v1089_v42, %v592_v38 }
 0x2ee   : > { %v1074_v2 = vpop.permute.xlu1 %1073 }
 0x2ef   : > { %1194 = vst.msk [vmem:[#allocation2 + $0x14] sm:$0xf] %vm1188_vm1, %v2061_v47  ;;  %v1121_v28 = vmax.f32 %v1105_v48, 0.0  ;;  %v1091_v25 = vadd.f32 %v1074_v2, %v995_v37 }
 0x2f1   : > { %v2069_v0 = vpack.c.bf16 %v1121_v28, %v1121_v28  ;;  %v1107_v49 = vadd.f32 %v1091_v25, %v594_v20 }
 0x2f3   : > { %1202 = vst.msk [vmem:[#allocation2 + $0x34] sm:$0xf] %vm1188_vm1, %v2069_v0  ;;  %v1123_v15 = vmax.f32 %v1107_v49, 0.0 }
 0x2f5   : > { %v2071_v51 = vpack.c.bf16 %v1123_v15, %v1123_v15 }
 0x2f7   : > { %1204 = vst.msk [vmem:[#allocation2 + $0x3c] sm:$0xf] %vm1188_vm1, %v2071_v51 }
 0x2f8 PF: > { %p2034_p5 = scmp.ne.s32.totalorder %s2353_s22, 1 }
 0x2fa   : > { %1208 = sbr.rel (%p2034_p5) target bundleno = 1375 (0x55f), region = 52 }
 0x2ff   : > { %v2254_v58 = vld [vmem:[#allocation2 + $0x38] sm:$0xff]   ;;  %v2255_v34 = vld [vmem:[#allocation2 + $0x30] sm:$0xff]   ;;  %v2256_v29 = vld [vmem:[#allocation2 + $0x28] sm:$0xff]   ;;  %vm1434_vm2 = vcmask 523264  }
 0x300   : > { %2136 = vmatprep.subr.bf16.mxu0 %v2254_v58  ;;  %2184 = vmatprep.subr.bf16.mxu1 %v2254_v58  ;;  %v2257_v53 = vld [vmem:[#allocation2 + $0x20] sm:$0xff]   ;;  %v2258_v57 = vld [vmem:[#allocation2 + $0x18] sm:$0xff]   ;;  %v2259_v63 = vld [vmem:[#allocation2 + $0x10] sm:$0xff]  }
 0x301   : > { %2137 = vmatpush3.bf16.msra.mxu0 %v2254_v58  ;;  %2192 = vmatpush3.bf16.msra.mxu1 %v2254_v58  ;;  %v2262_v60 = vld [vmem:[%s2362_s28] sm:$0xff]   ;;  %v2260_v61 = vld [vmem:[#allocation2 + $0x8] sm:$0xff]   ;;  %v2266_v33 = vld [vmem:[%s2362_s28 + $0x10] sm:$0xff]  }
 0x302   : > { %2138 = vmatprep.subr.bf16.mxu0 %v2255_v34  ;;  %2185 = vmatprep.subr.bf16.mxu1 %v2255_v34  ;;  %v2263_v56 = vld [vmem:[%s2362_s28 + $0x20] sm:$0xff]   ;;  %v2264_v44 = vld [vmem:[%s2362_s28 + $0x8] sm:$0xff]   ;;  %v2268_v5 = vld [vmem:[%s2362_s28 + $0x30] sm:$0xff]  }
 0x303   : > { %2152 = vmatprep.mubr.bf16.mxu0 %v2262_v60  ;;  %2160 = vmatprep.mubr.bf16.mxu1 %v2263_v56  ;;  %v2261_v17 = vld [vmem:[#allocation2] sm:$0xff]   ;;  %v2265_v11 = vld [vmem:[%s2362_s28 + $0x28] sm:$0xff]   ;;  %v2267_v18 = vld [vmem:[%s2362_s28 + $0x18] sm:$0xff]  }
 0x304   : > { %v2269_v1 = vld [vmem:[%s2362_s28 + $0x38] sm:$0xff]  }
 0x305   : > { %2139 = vmatpush3.bf16.msra.mxu0 %v2255_v34  ;;  %2193 = vmatpush3.bf16.msra.mxu1 %v2255_v34 }
 0x306   : > { %2140 = vmatprep.subr.bf16.mxu0 %v2256_v29  ;;  %2186 = vmatprep.subr.bf16.mxu1 %v2256_v29 }
 0x309   : > { %2141 = vmatpush3.bf16.msra.mxu0 %v2256_v29  ;;  %2194 = vmatpush3.bf16.msra.mxu1 %v2256_v29  ;;  %v2311_v29 = vmov 0  }
 0x30a   : > { %2142 = vmatprep.subr.bf16.mxu0 %v2257_v53  ;;  %2187 = vmatprep.subr.bf16.mxu1 %v2257_v53 }
 0x30b   : > { %2252 = vset.pattern.permute.xlu1 %v2311_v29  ;;  %2253 = vset.pattern.permute.xlu0 %v2311_v29 }
 0x30d   : > { %2143 = vmatpush3.bf16.msra.mxu0 %v2257_v53  ;;  %2195 = vmatpush3.bf16.msra.mxu1 %v2257_v53 }
 0x30e   : > { %2144 = vmatprep.subr.bf16.mxu0 %v2258_v57  ;;  %2188 = vmatprep.subr.bf16.mxu1 %v2258_v57 }
 0x311   : > { %2145 = vmatpush3.bf16.msra.mxu0 %v2258_v57  ;;  %2196 = vmatpush3.bf16.msra.mxu1 %v2258_v57 }
 0x312   : > { %2146 = vmatprep.subr.bf16.mxu0 %v2259_v63  ;;  %2189 = vmatprep.subr.bf16.mxu1 %v2259_v63 }
 0x315   : > { %2147 = vmatpush3.bf16.msra.mxu0 %v2259_v63  ;;  %2197 = vmatpush3.bf16.msra.mxu1 %v2259_v63 }
 0x316   : > { %2148 = vmatprep.subr.bf16.mxu0 %v2260_v61  ;;  %2190 = vmatprep.subr.bf16.mxu1 %v2260_v61 }
 0x319   : > { %2149 = vmatpush3.bf16.msra.mxu0 %v2260_v61  ;;  %2198 = vmatpush3.bf16.msra.mxu1 %v2260_v61 }
 0x31a   : > { %2150 = vmatprep.subr.bf16.mxu0 %v2261_v17  ;;  %2191 = vmatprep.subr.bf16.mxu1 %v2261_v17 }
 0x31d   : > { %2151 = vmatpush3.bf16.msra.mxu0 %v2261_v17  ;;  %2199 = vmatpush3.bf16.msra.mxu1 %v2261_v17 }
 0x320   : > { %2153 = vmatmul.mubr.bf16.vlgmr.msra.gmra.mxu0 %v2264_v44  ;;  %2161 = vmatmul.mubr.bf16.vlgmr.msra.gmra.mxu1 %v2265_v11 }
 0x321   : > { %2156 = vmatprep.mubr.bf16.mxu0 %v2266_v33  ;;  %2164 = vmatprep.mubr.bf16.mxu1 %v2268_v5 }
 0x328   : > { %2157 = vmatmul.mubr.bf16.gmra.mxu0 %v2267_v18  ;;  %2165 = vmatmul.mubr.bf16.gmra.mxu1 %v2269_v1 }
 0x3e0   : > { %v2799_v46 = vpop.f32.mrf.mxu0  ;;  %v2801_v6 = vpop.f32.mrf.mxu1 }
 0x3e1   : > { %v1465_v8 = vsel %vm1434_vm2, %v2801_v6, 0.0  ;;  %v1441_v9 = vsel %vm1434_vm2, %v2799_v46, 0.0  ;;  %v1501_v55 = vmul.f32 %v2799_v46, %v2799_v46  ;;  %v1509_v23 = vmul.f32 %v2801_v6, %v2801_v6 }
 0x3e2   : > { %1466 = vadd.xlane.f32.xlu0 %v1465_v8  ;;  %v2807_v10 = vpop.f32.mrf.mxu1  ;;  %1442 = vadd.xlane.f32.xlu1 %v1441_v9  ;;  %v2809_v41 = vpop.f32.mrf.mxu0 }
 0x3e3   : > { %v1435_v13 = vsel %vm1434_vm2, %v2809_v41, 0.0  ;;  %v1459_v26 = vsel %vm1434_vm2, %v2807_v10, 0.0  ;;  %v1521_v14 = vsel %vm1434_vm2, %v1501_v55, 0.0  ;;  %v1545_v59 = vsel %vm1434_vm2, %v1509_v23, 0.0 }
 0x3e4   : > { %v2811_v52 = vpop.f32.mrf.mxu0  ;;  %v2817_v21 = vpop.f32.mrf.mxu1  ;;  %v1499_v4 = vmul.f32 %v2809_v41, %v2809_v41  ;;  %v1507_v35 = vmul.f32 %v2807_v10, %v2807_v10 }
 0x3e5   : > { %v1444_v7 = vsel %vm1434_vm2, %v2811_v52, 0.0  ;;  %v1468_v19 = vsel %vm1434_vm2, %v2817_v21, 0.0  ;;  %v1502_v27 = vmul.f32 %v2811_v52, %v2811_v52  ;;  %v1510_v31 = vmul.f32 %v2817_v21, %v2817_v21 }
 0x3e6   : > { %1436 = vadd.xlane.f32.xlu0 %v1435_v13  ;;  %1445 = vadd.xlane.f32.xlu1 %v1444_v7  ;;  %v2825_v36 = vpop.f32.mrf.mxu1  ;;  %v2840_v22 = vpop.f32.mrf.mxu0  ;;  %v1515_v32 = vsel %vm1434_vm2, %v1499_v4, 0.0  ;;  %v1539_v24 = vsel %vm1434_vm2, %v1507_v35, 0.0 }
 0x3e7   : > { %v1462_v12 = vsel %vm1434_vm2, %v2825_v36, 0.0  ;;  %v1524_v50 = vsel %vm1434_vm2, %v1502_v27, 0.0  ;;  %v1548_v30 = vsel %vm1434_vm2, %v1510_v31, 0.0  ;;  %v1500_v39 = vmul.f32 %v2840_v22, %v2840_v22 }
 0x3e8   : > { %v2848_v54 = vpop.f32.mrf.mxu0  ;;  %v1508_v40 = vmul.f32 %v2825_v36, %v2825_v36  ;;  %v2856_v16 = vpop.f32.mrf.mxu1  ;;  %v1438_v62 = vsel %vm1434_vm2, %v2840_v22, 0.0 }
 0x3e9   : > { %v1518_v43 = vsel %vm1434_vm2, %v1500_v39, 0.0  ;;  %v1453_v37 = vsel %vm1434_vm2, %v2848_v54, 0.0  ;;  %v1477_v20 = vsel %vm1434_vm2, %v2856_v16, 0.0  ;;  %v1505_v58 = vmul.f32 %v2848_v54, %v2848_v54 }
 0x3ea   : > { %1460 = vadd.xlane.f32.xlu0 %v1459_v26  ;;  %1469 = vadd.xlane.f32.xlu1 %v1468_v19  ;;  %v2854_v45 = vpop.f32.mrf.mxu0  ;;  %v1542_v38 = vsel %vm1434_vm2, %v1508_v40, 0.0  ;;  %v2863_v42 = vpop.f32.mrf.mxu1  ;;  %v1513_v18 = vmul.f32 %v2856_v16, %v2856_v16 }
 0x3eb   : > { %v1447_v25 = vsel %vm1434_vm2, %v2854_v45, 0.0  ;;  %v1471_v15 = vsel %vm1434_vm2, %v2863_v42, 0.0  ;;  %v1533_v53 = vsel %vm1434_vm2, %v1505_v58, 0.0  ;;  %v1503_v56 = vmul.f32 %v2854_v45, %v2854_v45 }
 0x3ec   : > { %v2861_v3 = vpop.f32.mrf.mxu0  ;;  %v2869_v48 = vpop.f32.mrf.mxu1  ;;  %v1511_v44 = vmul.f32 %v2863_v42, %v2863_v42  ;;  %v1557_v1 = vsel %vm1434_vm2, %v1513_v18, 0.0 }
 0x3ed   : > { %v1456_v47 = vsel %vm1434_vm2, %v2861_v3, 0.0  ;;  %v1480_v2 = vsel %vm1434_vm2, %v2869_v48, 0.0  ;;  %v1506_v34 = vmul.f32 %v2861_v3, %v2861_v3  ;;  %v1514_v57 = vmul.f32 %v2869_v48, %v2869_v48 }
 0x3ee   : > { %1522 = vadd.xlane.f32.xlu0 %v1521_v14  ;;  %1463 = vadd.xlane.f32.xlu1 %v1462_v12  ;;  %v2875_v28 = vpop.f32.mrf.mxu0  ;;  %v2881_v49 = vpop.f32.mrf.mxu1  ;;  %v1527_v61 = vsel %vm1434_vm2, %v1503_v56, 0.0  ;;  %v1551_v33 = vsel %vm1434_vm2, %v1511_v44, 0.0 }
 0x3ef   : > { %v1450_v0 = vsel %vm1434_vm2, %v2875_v28, 0.0  ;;  %v1474_v51 = vsel %vm1434_vm2, %v2881_v49, 0.0  ;;  %v1536_v60 = vsel %vm1434_vm2, %v1506_v34, 0.0  ;;  %v1504_v63 = vmul.f32 %v2875_v28, %v2875_v28 }
 0x3f0   : > { %v1560_v17 = vsel %vm1434_vm2, %v1514_v57, 0.0  ;;  %v1512_v11 = vmul.f32 %v2881_v49, %v2881_v49 }
 0x3f1   : > { %v1530_v5 = vsel %vm1434_vm2, %v1504_v63, 0.0 }
 0x3f2   : > { %1546 = vadd.xlane.f32.xlu0 %v1545_v59  ;;  %1525 = vadd.xlane.f32.xlu1 %v1524_v50  ;;  %v1554_v8 = vsel %vm1434_vm2, %v1512_v11, 0.0 }
 0x3f6   : > { %1516 = vadd.xlane.f32.xlu0 %v1515_v32  ;;  %1549 = vadd.xlane.f32.xlu1 %v1548_v30 }
 0x3fa   : > { %1540 = vadd.xlane.f32.xlu0 %v1539_v24  ;;  %1519 = vadd.xlane.f32.xlu1 %v1518_v43 }
 0x3fe   : > { %1543 = vadd.xlane.f32.xlu1 %v1542_v38  ;;  %1439 = vadd.xlane.f32.xlu0 %v1438_v62 }
 0x402   : > { %1454 = vadd.xlane.f32.xlu0 %v1453_v37  ;;  %1457 = vadd.xlane.f32.xlu1 %v1456_v47 }
 0x406   : > { %1478 = vadd.xlane.f32.xlu0 %v1477_v20  ;;  %1481 = vadd.xlane.f32.xlu1 %v1480_v2 }
 0x40a   : > { %1448 = vadd.xlane.f32.xlu0 %v1447_v25  ;;  %1451 = vadd.xlane.f32.xlu1 %v1450_v0 }
 0x40e   : > { %1472 = vadd.xlane.f32.xlu0 %v1471_v15  ;;  %1475 = vadd.xlane.f32.xlu1 %v1474_v51 }
 0x412   : > { %1534 = vadd.xlane.f32.xlu0 %v1533_v53  ;;  %1537 = vadd.xlane.f32.xlu1 %v1536_v60 }
 0x416   : > { %1528 = vadd.xlane.f32.xlu0 %v1527_v61  ;;  %1561 = vadd.xlane.f32.xlu1 %v1560_v17 }
 0x41a   : > { %1552 = vadd.xlane.f32.xlu0 %v1551_v33  ;;  %1531 = vadd.xlane.f32.xlu1 %v1530_v5 }
 0x41e   : > { %1558 = vadd.xlane.f32.xlu0 %v1557_v1  ;;  %1555 = vadd.xlane.f32.xlu1 %v1554_v8 }
 0x46b   : > { %v1467_v9 = vpop.xlane.xlu0 %1466  ;;  %v1443_v13 = vpop.xlane.xlu1 %1442 }
 0x46c   : > { %v2911_v14 = vmul.f32 0.015625, %v1443_v13  ;;  %v2913_v12 = vmul.f32 0.015625, %v1467_v9 }
 0x46e   : > { %v1581_v59 = vmul.f32 %v2911_v14, %v2911_v14  ;;  %v1589_v32 = vmul.f32 %v2913_v12, %v2913_v12 }
 0x46f   : > { %v1437_v7 = vpop.xlane.xlu0 %1436  ;;  %v1446_v26 = vpop.xlane.xlu1 %1445 }
 0x470   : > { %v2917_v50 = vmul.f32 0.015625, %v1446_v26  ;;  %v2921_v30 = vmul.f32 0.015625, %v1437_v7 }
 0x472   : > { %v1582_v24 = vmul.f32 %v2917_v50, %v2917_v50  ;;  %v1579_v2 = vmul.f32 %v2921_v30, %v2921_v30 }
 0x473   : > { %v1461_v19 = vpop.xlane.xlu0 %1460  ;;  %v1470_v55 = vpop.xlane.xlu1 %1469 }
 0x474   : > { %v2925_v62 = vmul.f32 0.015625, %v1470_v55  ;;  %v2929_v15 = vmul.f32 0.015625, %v1461_v19 }
 0x476   : > { %v1590_v34 = vmul.f32 %v2925_v62, %v2925_v62  ;;  %v1587_v44 = vmul.f32 %v2929_v15, %v2929_v15 }
 0x477   : > { %v1523_v23 = vpop.xlane.xlu0 %1522  ;;  %v1464_v27 = vpop.xlane.xlu1 %1463 }
 0x478   : > { %v1565_v4 = vmul.f32 0.015625, %v1523_v23  ;;  %v2933_v57 = vmul.f32 0.015625, %v1464_v27 }
 0x47a   : > { %v1597_v31 = vsub.f32 %v1565_v4, %v1581_v59  ;;  %v1588_v9 = vmul.f32 %v2933_v57, %v2933_v57 }
 0x47b   : > { %v1547_v35 = vpop.xlane.xlu0 %1546  ;;  %v1526_v39 = vpop.xlane.xlu1 %1525 }
 0x47c   : > { %v1613_v43 = vmax.f32 %v1597_v31, 0.0  ;;  %v1573_v40 = vmul.f32 0.015625, %v1547_v35  ;;  %v1566_v38 = vmul.f32 0.015625, %v1526_v39  ;;  %v1629_v39 = vld [vmem:[%s2367_s7 + $0x10] sm:$0xff] }
 0x47e   : > { %v1645_v37 = vadd.f32 1e-05, %v1613_v43  ;;  %v1605_v47 = vsub.f32 %v1573_v40, %v1589_v32  ;;  %v1598_v20 = vsub.f32 %v1566_v38, %v1582_v24 }
 0x47f   : > { %v1517_v25 = vpop.xlane.xlu0 %1516  ;;  %v1550_v0 = vpop.xlane.xlu1 %1549 }
 0x480   : > { %2270 = vrsqrt.f32 %v1645_v37  ;;  %v1621_v51 = vmax.f32 %v1605_v47, 0.0  ;;  %v1563_v58 = vmul.f32 0.015625, %v1517_v25  ;;  %v1614_v29 = vmax.f32 %v1598_v20, 0.0  ;;  %v1637_v25 = vld [vmem:[%s2367_s7 + $0x50] sm:$0xff] }
 0x481   : > { %v1574_v53 = vmul.f32 0.015625, %v1550_v0 }
 0x482   : > { %v1653_v60 = vadd.f32 1e-05, %v1621_v51  ;;  %v1595_v56 = vsub.f32 %v1563_v58, %v1579_v2  ;;  %v1646_v5 = vadd.f32 1e-05, %v1614_v29 }
 0x483   : > { %v1606_v63 = vsub.f32 %v1574_v53, %v1590_v34  ;;  %v1541_v61 = vpop.xlane.xlu0 %1540  ;;  %v1520_v17 = vpop.xlane.xlu1 %1519  ;;  %v1627_v53 = vld [vmem:[%s2367_s7] sm:$0xff] }
 0x484   : > { %2272 = vrsqrt.f32 %v1653_v60  ;;  %v1611_v11 = vmax.f32 %v1595_v56, 0.0  ;;  %v1571_v33 = vmul.f32 0.015625, %v1541_v61  ;;  %v1564_v27 = vmul.f32 0.015625, %v1520_v17 }
 0x485   : > { %v1622_v18 = vmax.f32 %v1606_v63, 0.0 }
 0x486   : > { %v1643_v1 = vadd.f32 1e-05, %v1611_v11  ;;  %v1603_v8 = vsub.f32 %v1571_v33, %v1587_v44  ;;  %v1638_v11 = vld [vmem:[%s2367_s7 + $0x58] sm:$0xff]  ;;  %v1635_v33 = vld [vmem:[%s2367_s7 + $0x40] sm:$0xff] }
 0x487   : > { %v1654_v13 = vadd.f32 1e-05, %v1622_v18  ;;  %v1544_v7 = vpop.xlane.xlu1 %1543  ;;  %v1440_v26 = vpop.xlane.xlu0 %1439 }
 0x488   : > { %2274 = vrsqrt.f32 %v1643_v1  ;;  %v1619_v19 = vmax.f32 %v1603_v8, 0.0  ;;  %v1572_v55 = vmul.f32 0.015625, %v1544_v7  ;;  %v2939_v23 = vmul.f32 0.015625, %v1440_v26 }
 0x489   : > { %2276 = vrsqrt.f32 %v1646_v5  ;;  %v1630_v5 = vld [vmem:[%s2367_s7 + $0x18] sm:$0xff] }
 0x48a   : > { %2278 = vrsqrt.f32 %v1654_v13  ;;  %v1651_v59 = vadd.f32 1e-05, %v1619_v19  ;;  %v1604_v4 = vsub.f32 %v1572_v55, %v1588_v9  ;;  %v1580_v31 = vmul.f32 %v2939_v23, %v2939_v23  ;;  %v1636_v55 = vld [vmem:[%s2367_s7 + $0x48] sm:$0xff] }
 0x48b   : > { %v1455_v32 = vpop.xlane.xlu0 %1454  ;;  %v1458_v35 = vpop.xlane.xlu1 %1457 }
 0x48c   : > { %2280 = vrsqrt.f32 %v1651_v59  ;;  %v1620_v24 = vmax.f32 %v1604_v4, 0.0  ;;  %v1596_v43 = vsub.f32 %v1564_v27, %v1580_v31  ;;  %v2953_v18 = vmul.f32 0.015625, %v1455_v32 }
 0x48d   : > { %v2271_v40 = vpop.eup %2270  ;;  %v2956_v8 = vmul.f32 0.015625, %v1458_v35 }
 0x48e   : > { %v1652_v38 = vadd.f32 1e-05, %v1620_v24  ;;  %v1612_v37 = vmax.f32 %v1596_v43, 0.0  ;;  %v1677_v47 = vmul.f32 %v2271_v40, %v1629_v39  ;;  %v1585_v27 = vmul.f32 %v2953_v18, %v2953_v18  ;;  %v1628_v39 = vld [vmem:[%s2367_s7 + $0x8] sm:$0xff] }
 0x48f   : > { %v2944_v20 = vpop.xlane.xlu0 %1478  ;;  %v1482_v2 = vpop.xlane.xlu1 %1481  ;;  %v1586_v32 = vmul.f32 %v2956_v8, %v2956_v8 }
 0x490   : > { %2282 = vrsqrt.f32 %v1652_v38  ;;  %v1644_v0 = vadd.f32 1e-05, %v1612_v37  ;;  %1751 = vperm.xlu1 %2252, %v1677_v47   ;;  %v2966_v35 = vmul.f32 0.015625, %v1482_v2  ;;  %v1709_v38 = vmul.f32 %v1677_v47, %v2911_v14 }
 0x491   : > { %v2273_v51 = vpop.eup %2272 }
 0x492   : > { %2284 = vrsqrt.f32 %v1644_v0  ;;  %v1685_v58 = vmul.f32 %v2273_v51, %v1637_v25  ;;  %v1594_v14 = vmul.f32 %v2966_v35, %v2966_v35 }
 0x493   : > { %v1449_v34 = vpop.xlane.xlu0 %1448  ;;  %v1452_v29 = vpop.xlane.xlu1 %1451 }
 0x494   : > { %1791 = vperm.xlu1 %2252, %v1685_v58   ;;  %v2971_v25 = vmul.f32 0.015625, %v1449_v34 }
 0x495   : > { %v2275_v60 = vpop.eup %2274 }
 0x496   : > { %v2277_v56 = vpop.eup %2276  ;;  %v2948_v63 = vmul.f32 %v2275_v60, %v1627_v53  ;;  %v1694_v60 = vld [vmem:[%s2372_s10 + $0x18] sm:$0xff] }
 0x497   : > { %v2279_v61 = vpop.eup %2278  ;;  %v1473_v17 = vpop.xlane.xlu0 %1472  ;;  %v1678_v7 = vmul.f32 %v2277_v56, %v1630_v5  ;;  %v1693_v56 = vld [vmem:[%s2372_s10 + $0x10] sm:$0xff] }
 0x498   : > { %v1476_v44 = vpop.xlane.xlu1 %1475  ;;  %1741 = vperm.xlu0 %2253, %v2948_v63   ;;  %v1686_v9 = vmul.f32 %v2279_v61, %v1638_v11  ;;  %v2975_v61 = vmul.f32 0.015625, %v1452_v29  ;;  %v1717_v11 = vmul.f32 %v1685_v58, %v2913_v12  ;;  %v2984_v29 = vmul.f32 0.015625, %v2944_v20 }
 0x499   : > { %v2281_v1 = vpop.eup %2280  ;;  %v1710_v40 = vmul.f32 %v1678_v7, %v2917_v50 }
 0x49a   : > { %v2958_v13 = vmul.f32 %v2281_v1, %v1635_v33  ;;  %v1718_v34 = vmul.f32 %v1686_v9, %v2925_v62  ;;  %v1701_v33 = vld [vmem:[%s2372_s10 + $0x50] sm:$0xff]  ;;  %v2990_v62 = vmul.f32 0.015625, %v1473_v17 }
 0x49b   : > { %v1535_v26 = vpop.xlane.xlu0 %1534 }
 0x49c   : > { %v1538_v19 = vpop.xlane.xlu1 %1537  ;;  %v1569_v59 = vmul.f32 0.015625, %v1535_v26  ;;  %1796 = vperm.xlu0 %2253, %v1686_v9   ;;  %1781 = vperm.xlu1 %2252, %v2958_v13   ;;  %v1726_v26 = vsub.f32 %v1694_v60, %v1710_v40 }
 0x49d   : > { %v1570_v4 = vmul.f32 0.015625, %v1538_v19  ;;  %v2283_v31 = vpop.eup %2282  ;;  %v1725_v19 = vsub.f32 %v1693_v56, %v1709_v38  ;;  %v1692_v56 = vld [vmem:[%s2372_s10 + $0x8] sm:$0xff] }
 0x49e   : > { %v1601_v24 = vsub.f32 %v1569_v59, %v1585_v27  ;;  %v1684_v43 = vmul.f32 %v2283_v31, %v1636_v55  ;;  %v1702_v55 = vld [vmem:[%s2372_s10 + $0x58] sm:$0xff]  ;;  %v1733_v31 = vsub.f32 %v1701_v33, %v1717_v11  ;;  %v1707_v11 = vmul.f32 %v2948_v63, %v2921_v30 }
 0x49f   : > { %v2285_v37 = vpop.eup %2284  ;;  %v1602_v0 = vsub.f32 %v1570_v4, %v1586_v32  ;;  %v1529_v51 = vpop.xlane.xlu0 %1528  ;;  %v1584_v4 = vmul.f32 %v2975_v61, %v2975_v61  ;;  %v2993_v32 = vmul.f32 0.015625, %v1476_v44 }
 0x4a0   : > { %v1562_v53 = vpop.xlane.xlu1 %1561  ;;  %v1617_v2 = vmax.f32 %v1601_v24, 0.0  ;;  %1786 = vperm.xlu0 %2253, %v1684_v43   ;;  %1756 = vperm.xlu1 %2252, %v1678_v7   ;;  %v1676_v50 = vmul.f32 %v2285_v37, %v1628_v39  ;;  %v1567_v1 = vmul.f32 0.015625, %v1529_v51  ;;  %v1583_v7 = vmul.f32 %v2971_v25, %v2971_v25 }
 0x4a1   : > { %v1578_v47 = vmul.f32 0.015625, %v1562_v53  ;;  %v1618_v12 = vmax.f32 %v1602_v0, 0.0  ;;  %v1734_v24 = vsub.f32 %v1702_v55, %v1718_v34  ;;  %v1593_v0 = vmul.f32 %v2984_v29, %v2984_v29 }
 0x4a2   : > { %v1649_v5 = vadd.f32 1e-05, %v1617_v2  ;;  %v1708_v20 = vmul.f32 %v1676_v50, %v2939_v23  ;;  %v1599_v40 = vsub.f32 %v1567_v1, %v1583_v7  ;;  %v1591_v23 = vmul.f32 %v2990_v62, %v2990_v62 }
 0x4a3   : > { %v1610_v58 = vsub.f32 %v1578_v47, %v1594_v14  ;;  %v1553_v27 = vpop.xlane.xlu0 %1552  ;;  %v1650_v17 = vadd.f32 1e-05, %v1618_v12  ;;  %v1592_v14 = vmul.f32 %v2993_v32, %v2993_v32  ;;  %v1716_v34 = vmul.f32 %v1684_v43, %v2933_v57  ;;  %v1700_v12 = vld [vmem:[%s2372_s10 + $0x48] sm:$0xff] }
 0x4a4   : > { %v1532_v59 = vpop.xlane.xlu1 %1531  ;;  %1852 = vperm.xlu0 %2253, %v1726_v26   ;;  %1847 = vperm.xlu1 %2252, %v1725_v19   ;;  %2286 = vrsqrt.f32 %v1649_v5  ;;  %v1575_v38 = vmul.f32 0.015625, %v1553_v27  ;;  %v1615_v33 = vmax.f32 %v1599_v40, 0.0  ;;  %v1724_v26 = vsub.f32 %v1692_v56, %v1708_v20  ;;  %v1691_v19 = vld [vmem:[%s2372_s10] sm:$0xff]  ;;  %v1632_v56 = vld [vmem:[%s2367_s7 + $0x28] sm:$0xff] }
 0x4a5   : > { %v1568_v9 = vmul.f32 0.015625, %v1532_v59  ;;  %v1626_v39 = vmax.f32 %v1610_v58, 0.0  ;;  %v1723_v63 = vsub.f32 %v1691_v19, %v1707_v11  ;;  %v1715_v27 = vmul.f32 %v2958_v13, %v2929_v15  ;;  %v1633_v13 = vld [vmem:[%s2367_s7 + $0x30] sm:$0xff] }
 0x4a6   : > { %v1607_v5 = vsub.f32 %v1575_v38, %v1591_v23  ;;  %v1647_v57 = vadd.f32 1e-05, %v1615_v33 }
 0x4a7   : > { %v1600_v37 = vsub.f32 %v1568_v9, %v1584_v4  ;;  %v1658_v51 = vadd.f32 1e-05, %v1626_v39  ;;  %v1559_v53 = vpop.xlane.xlu0 %1558  ;;  %v1732_v4 = vsub.f32 %v1700_v12, %v1716_v34  ;;  %v1642_v39 = vld [vmem:[%s2367_s7 + $0x78] sm:$0xff]  ;;  %v1696_v12 = vld [vmem:[%s2372_s10 + $0x28] sm:$0xff] }
 0x4a8   : > { %v1556_v60 = vpop.xlane.xlu1 %1555  ;;  %v1577_v2 = vmul.f32 0.015625, %v1559_v53  ;;  %1892 = vperm.xlu0 %2253, %v1734_v24   ;;  %1887 = vperm.xlu1 %2252, %v1733_v31   ;;  %v1623_v43 = vmax.f32 %v1607_v5, 0.0  ;;  %v1699_v31 = vld [vmem:[%s2372_s10 + $0x40] sm:$0xff]  ;;  %v1698_v5 = vld [vmem:[%s2372_s10 + $0x38] sm:$0xff] }
 0x4a9   : > { %v1616_v44 = vmax.f32 %v1600_v37, 0.0  ;;  %2288 = vrsqrt.f32 %v1658_v51  ;;  %v1576_v47 = vmul.f32 0.015625, %v1556_v60  ;;  %v1731_v20 = vsub.f32 %v1699_v31, %v1715_v27  ;;  %v1640_v60 = vld [vmem:[%s2367_s7 + $0x68] sm:$0xff]  ;;  %v1695_v31 = vld [vmem:[%s2372_s10 + $0x20] sm:$0xff] }
 0x4aa   : > { %v1609_v1 = vsub.f32 %v1577_v2, %v1593_v0  ;;  %2290 = vrsqrt.f32 %v1650_v17  ;;  %v1634_v0 = vld [vmem:[%s2367_s7 + $0x38] sm:$0xff]  ;;  %v1641_v17 = vld [vmem:[%s2367_s7 + $0x70] sm:$0xff] }
 0x4ab   : > { %v1648_v55 = vadd.f32 1e-05, %v1616_v44  ;;  %v1608_v7 = vsub.f32 %v1576_v47, %v1592_v14  ;;  %v1631_v47 = vld [vmem:[%s2367_s7 + $0x20] sm:$0xff] }
 0x4ac   : > { %v1625_v58 = vmax.f32 %v1609_v1, 0.0  ;;  %1842 = vperm.xlu0 %2253, %v1724_v26   ;;  %1746 = vperm.xlu1 %2252, %v1676_v50   ;;  %v1655_v50 = vadd.f32 1e-05, %v1623_v43  ;;  %v1697_v43 = vld [vmem:[%s2372_s10 + $0x30] sm:$0xff] }
 0x4ad   : > { %v1624_v30 = vmax.f32 %v1608_v7, 0.0  ;;  %2292 = vrsqrt.f32 %v1648_v55  ;;  %v1639_v55 = vld [vmem:[%s2367_s7 + $0x60] sm:$0xff] }
 0x4ae   : > { %v1657_v59 = vadd.f32 1e-05, %v1625_v58 }
 0x4af   : > { %v1656_v9 = vadd.f32 1e-05, %v1624_v30 }
 0x4b0   : > { %2294 = vrsqrt.f32 %v1657_v59  ;;  %1882 = vperm.xlu0 %2253, %v1732_v4   ;;  %1837 = vperm.xlu1 %2252, %v1723_v63   ;;  %v1704_v63 = vld [vmem:[%s2372_s10 + $0x68] sm:$0xff] }
 0x4b1   : > { %2296 = vrsqrt.f32 %v1656_v9  ;;  %v2287_v15 = vpop.eup %2286 }
 0x4b2   : > { %2298 = vrsqrt.f32 %v1647_v57  ;;  %v1681_v40 = vmul.f32 %v2287_v15, %v1633_v13  ;;  %v1705_v13 = vld [vmem:[%s2372_s10 + $0x70] sm:$0xff] }
 0x4b3   : > { %2300 = vrsqrt.f32 %v1655_v50 }
 0x4b4   : > { %1877 = vperm.xlu1 %2252, %v1731_v20   ;;  %v1713_v27 = vmul.f32 %v1681_v40, %v2953_v18  ;;  %v1703_v20 = vld [vmem:[%s2372_s10 + $0x60] sm:$0xff] }
 0x4b6   : > { %v2289_v24 = vpop.eup %2288  ;;  %v1729_v4 = vsub.f32 %v1697_v43, %v1713_v27 }
 0x4b7   : > { %v1690_v38 = vmul.f32 %v2289_v24, %v1642_v39  ;;  %v2291_v37 = vpop.eup %2290 }
 0x4b8   : > { %1771 = vperm.xlu1 %2252, %v1681_v40   ;;  %v1682_v51 = vmul.f32 %v2291_v37, %v1634_v0 }
 0x4b9   : > { %1816 = vperm.xlu0 %2253, %v1690_v38   ;;  %v1722_v59 = vmul.f32 %v1690_v38, %v2966_v35 }
 0x4ba   : > { %v2293_v53 = vpop.eup %2292  ;;  %v1714_v34 = vmul.f32 %v1682_v51, %v2956_v8 }
 0x4bb   : > { %v1680_v33 = vmul.f32 %v2293_v53, %v1632_v56 }
 0x4bc   : > { %v1730_v19 = vsub.f32 %v1698_v5, %v1714_v34 }
 0x4bd   : > { %v2295_v23 = vpop.eup %2294  ;;  %v1712_v7 = vmul.f32 %v1680_v33, %v2975_v61  ;;  %v1706_v61 = vld [vmem:[%s2372_s10 + $0x78] sm:$0xff] }
 0x4be   : > { %v2297_v44 = vpop.eup %2296  ;;  %v1689_v2 = vmul.f32 %v2295_v23, %v1641_v17  ;;  %v1738_v9 = vsub.f32 %v1706_v61, %v1722_v59 }
 0x4bf   : > { %v2299_v11 = vpop.eup %2298  ;;  %v1688_v14 = vmul.f32 %v2297_v44, %v1640_v60  ;;  %v1728_v30 = vsub.f32 %v1696_v12, %v1712_v7 }
 0x4c0   : > { %1811 = vperm.xlu1 %2252, %v1689_v2   ;;  %v1679_v1 = vmul.f32 %v2299_v11, %v1631_v47  ;;  %v2301_v26 = vpop.eup %2300  ;;  %v1721_v35 = vmul.f32 %v1689_v2, %v2984_v29 }
 0x4c1   : > { %1806 = vperm.xlu0 %2253, %v1688_v14   ;;  %v1687_v58 = vmul.f32 %v2301_v26, %v1639_v55  ;;  %v1720_v8 = vmul.f32 %v1688_v14, %v2993_v32 }
 0x4c2   : > { %v1711_v32 = vmul.f32 %v1679_v1, %v2971_v25  ;;  %v1737_v39 = vsub.f32 %v1705_v13, %v1721_v35 }
 0x4c3   : > { %v1736_v57 = vsub.f32 %v1704_v63, %v1720_v8  ;;  %v1719_v18 = vmul.f32 %v1687_v58, %v2990_v62 }
 0x4c4   : > { %1761 = vperm.xlu1 %2252, %v1679_v1   ;;  %v1727_v50 = vsub.f32 %v1695_v31, %v1711_v32 }
 0x4c5   : > { %1872 = vperm.xlu0 %2253, %v1730_v19   ;;  %v1735_v15 = vsub.f32 %v1703_v20, %v1719_v18 }
 0x4c8   : > { %1801 = vperm.xlu1 %2252, %v1687_v58  }
 0x4c9   : > { %1862 = vperm.xlu0 %2253, %v1728_v30  }
 0x4cc   : > { %1776 = vperm.xlu1 %2252, %v1682_v51  }
 0x4cd   : > { %1902 = vperm.xlu0 %2253, %v1736_v57  }
 0x4d0   : > { %1867 = vperm.xlu1 %2252, %v1729_v4  }
 0x4d1   : > { %1912 = vperm.xlu0 %2253, %v1738_v9  }
 0x4d4   : > { %1766 = vperm.xlu1 %2252, %v1680_v33  }
 0x4d8   : > { %1857 = vperm.xlu1 %2252, %v1727_v50  }
 0x4dc   : > { %1897 = vperm.xlu1 %2252, %v1735_v15  }
 0x4e0   : > { %1907 = vperm.xlu1 %2252, %v1737_v39  }
 0x50b   : > { %v1752_v24 = vpop.permute.xlu1 %1751 }
 0x50c   : > { %v1821_v51 = vmul.f32 %v2799_v46, %v1752_v24 }
 0x50f   : > { %v1792_v40 = vpop.permute.xlu1 %1791 }
 0x510   : > { %v1829_v29 = vmul.f32 %v2801_v6, %v1792_v40 }
 0x513   : > { %v1742_v38 = vpop.permute.xlu0 %1741 }
 0x514   : > { %v1819_v47 = vmul.f32 %v1742_v38, %v2809_v41 }
 0x517   : > { %v1797_v37 = vpop.permute.xlu0 %1796  ;;  %v1782_v0 = vpop.permute.xlu1 %1781 }
 0x518   : > { %v1830_v44 = vmul.f32 %v2817_v21, %v1797_v37  ;;  %v1827_v55 = vmul.f32 %v1782_v0, %v2807_v10 }
 0x51b   : > { %v1787_v25 = vpop.permute.xlu0 %1786  ;;  %v1757_v17 = vpop.permute.xlu1 %1756 }
 0x51c   : > { %v1822_v62 = vmul.f32 %v2811_v52, %v1757_v17  ;;  %v1828_v34 = vmul.f32 %v1787_v25, %v2825_v36 }
 0x51f   : > { %v1853_v53 = vpop.permute.xlu0 %1852  ;;  %v1848_v60 = vpop.permute.xlu1 %1847 }
 0x520   : > { %v1918_v56 = vadd.f32 %v1853_v53, %v1822_v62  ;;  %v1917_v23 = vadd.f32 %v1848_v60, %v1821_v51 }
 0x522   : > { %1934 = vst.msk [vmem:[%s3123_s6 + $0x18] sm:$0xff] %vm1434_vm2, %v1918_v56  ;;  %1933 = vst.msk [vmem:[%s3123_s6 + $0x10] sm:$0xff] %vm1434_vm2, %v1917_v23 }
 0x523   : > { %v1893_v46 = vpop.permute.xlu0 %1892  ;;  %v1888_v52 = vpop.permute.xlu1 %1887 }
 0x524   : > { %v1926_v2 = vadd.f32 %v1893_v46, %v1830_v44  ;;  %v1925_v11 = vadd.f32 %v1888_v52, %v1829_v29 }
 0x526   : > { %1942 = vst.msk [vmem:[%s3123_s6 + $0x58] sm:$0xff] %vm1434_vm2, %v1926_v2  ;;  %1941 = vst.msk [vmem:[%s3123_s6 + $0x50] sm:$0xff] %vm1434_vm2, %v1925_v11 }
 0x527   : > { %v1843_v6 = vpop.permute.xlu0 %1842  ;;  %v1747_v21 = vpop.permute.xlu1 %1746 }
 0x528   : > { %v1820_v14 = vmul.f32 %v1747_v21, %v2840_v22 }
 0x52a   : > { %v1916_v33 = vadd.f32 %v1843_v6, %v1820_v14 }
 0x52b   : > { %v1883_v5 = vpop.permute.xlu0 %1882  ;;  %v1838_v1 = vpop.permute.xlu1 %1837 }
 0x52c   : > { %1932 = vst.msk [vmem:[%s3123_s6 + $0x8] sm:$0xff] %vm1434_vm2, %v1916_v33  ;;  %v1924_v26 = vadd.f32 %v1883_v5, %v1828_v34  ;;  %v1915_v19 = vadd.f32 %v1838_v1, %v1819_v47 }
 0x52e   : > { %1940 = vst.msk [vmem:[%s3123_s6 + $0x48] sm:$0xff] %vm1434_vm2, %v1924_v26  ;;  %1931 = vst.msk [vmem:[%s3123_s6] sm:$0xff] %vm1434_vm2, %v1915_v19 }
 0x52f   : > { %v1878_v41 = vpop.permute.xlu1 %1877 }
 0x530   : > { %v1923_v36 = vadd.f32 %v1878_v41, %v1827_v55 }
 0x532   : > { %1939 = vst.msk [vmem:[%s3123_s6 + $0x40] sm:$0xff] %vm1434_vm2, %v1923_v36 }
 0x533   : > { %v1772_v22 = vpop.permute.xlu1 %1771 }
 0x534   : > { %v1817_v7 = vpop.permute.xlu0 %1816  ;;  %v1825_v4 = vmul.f32 %v2848_v54, %v1772_v22 }
 0x535   : > { %v1834_v32 = vmul.f32 %v2869_v48, %v1817_v7 }
 0x53b   : > { %v1812_v10 = vpop.permute.xlu1 %1811 }
 0x53c   : > { %v1807_v12 = vpop.permute.xlu0 %1806 }
 0x53d   : > { %v1832_v27 = vmul.f32 %v1807_v12, %v2881_v49 }
 0x53f   : > { %v1762_v58 = vpop.permute.xlu1 %1761 }
 0x540   : > { %v1873_v30 = vpop.permute.xlu0 %1872  ;;  %v1823_v18 = vmul.f32 %v1762_v58, %v2854_v45 }
 0x543   : > { %v1802_v8 = vpop.permute.xlu1 %1801 }
 0x544   : > { %v1863_v63 = vpop.permute.xlu0 %1862  ;;  %v1831_v13 = vmul.f32 %v1802_v8, %v2863_v42 }
 0x547   : > { %v1777_v57 = vpop.permute.xlu1 %1776 }
 0x548   : > { %v1903_v43 = vpop.permute.xlu0 %1902  ;;  %v1826_v59 = vmul.f32 %v2861_v3, %v1777_v57 }
 0x549   : > { %v1928_v61 = vadd.f32 %v1903_v43, %v1832_v27 }
 0x54a   : > { %v1922_v9 = vadd.f32 %v1873_v30, %v1826_v59 }
 0x54b   : > { %1944 = vst.msk [vmem:[%s3123_s6 + $0x68] sm:$0xff] %vm1434_vm2, %v1928_v61  ;;  %v1868_v31 = vpop.permute.xlu1 %1867 }
 0x54c   : > { %1938 = vst.msk [vmem:[%s3123_s6 + $0x38] sm:$0xff] %vm1434_vm2, %v1922_v9  ;;  %v1913_v49 = vpop.permute.xlu0 %1912  ;;  %v1921_v50 = vadd.f32 %v1868_v31, %v1825_v4 }
 0x54d   : > { %v1930_v3 = vadd.f32 %v1913_v49, %v1834_v32 }
 0x54e   : > { %1937 = vst.msk [vmem:[%s3123_s6 + $0x30] sm:$0xff] %vm1434_vm2, %v1921_v50 }
 0x54f   : > { %1946 = vst.msk [vmem:[%s3123_s6 + $0x78] sm:$0xff] %vm1434_vm2, %v1930_v3  ;;  %v1767_v54 = vpop.permute.xlu1 %1766 }
 0x550   : > { %v1824_v48 = vmul.f32 %v1767_v54, %v2875_v28  ;;  %v1833_v28 = vmul.f32 %v2856_v16, %v1812_v10 }
 0x552   : > { %v1920_v20 = vadd.f32 %v1863_v63, %v1824_v48 }
 0x553   : > { %v1858_v15 = vpop.permute.xlu1 %1857 }
 0x554   : > { %1936 = vst.msk [vmem:[%s3123_s6 + $0x28] sm:$0xff] %vm1434_vm2, %v1920_v20  ;;  %v1919_v35 = vadd.f32 %v1858_v15, %v1823_v18 }
 0x556   : > { %1935 = vst.msk [vmem:[%s3123_s6 + $0x20] sm:$0xff] %vm1434_vm2, %v1919_v35 }
 0x557   : > { %v1898_v39 = vpop.permute.xlu1 %1897 }
 0x558   : > { %v1927_v24 = vadd.f32 %v1898_v39, %v1831_v13 }
 0x55a   : > { %1943 = vst.msk [vmem:[%s3123_s6 + $0x60] sm:$0xff] %vm1434_vm2, %v1927_v24 }
 0x55b   : > { %v1908_v45 = vpop.permute.xlu1 %1907 }
 0x55c   : > { %v1929_v40 = vadd.f32 %v1908_v45, %v1833_v28 }
 0x55e   : > { %1945 = vst.msk [vmem:[%s3123_s6 + $0x70] sm:$0xff] %vm1434_vm2, %v1929_v40 }
 0x55f PF: > { %s16_s21 = sadd.s32 1, %s2308_s21  }
 0x560   : > { %p13_p6 = scmp.ge.s32.totalorder %s16_s21, 4  }
 0x562   :  { %15 = sbr.rel (!%p13_p6) target bundleno = 1 (0x1), region = 84 }

</bundles_post_ra>
